<compile_context>
chip_gen: v7x
topology: tpu7x:2x2x1
jax: 0.10.0
libtpu: 0.0.40
codegen_flags: <defaults>
</compile_context>

<pallas_src>
import jax
import jax.numpy as jnp
from jax import lax
from jax.experimental import pallas as pl
from jax.experimental.pallas import tpu as pltpu


# ----------------------------------------------------------------------------
# Pallas kernels (one grid step == one batch element)
# ----------------------------------------------------------------------------
def _deconv_in_relu_kernel(w_ref, p_ref, g_ref, b_ref, o_ref):
    """[Cout,K]bf16 @ [K,M]bf16 -> f32, then InstanceNorm(affine)+ReLU epilogue."""
    acc = jnp.dot(w_ref[...], p_ref[0],
                  preferred_element_type=jnp.float32)          # (Cout, M), f32 acc
    mean = jnp.mean(acc, axis=-1, keepdims=True)
    var = jnp.mean((acc - mean) ** 2, axis=-1, keepdims=True)  # biased, as torch
    y = (acc - mean) * lax.rsqrt(var + 1e-5) * g_ref[...] + b_ref[...]
    o_ref[0] = jnp.maximum(y, 0.0).astype(o_ref.dtype)


def _conv_tanh_kernel(w_ref, p_ref, o_ref):
    """[Cout,K]bf16 @ [K,M]bf16 -> f32, then tanh epilogue."""
    acc = jnp.dot(w_ref[...], p_ref[0], preferred_element_type=jnp.float32)
    o_ref[0] = jnp.tanh(acc).astype(o_ref.dtype)


# ----------------------------------------------------------------------------
# Plain-JAX glue: transposed im2col (slice/stack/reshape only, no transposes)
# ----------------------------------------------------------------------------
def _dilated_padded(x):
    """ConvTranspose2d(k=4,s=2,p=1) == stride-1 conv over the 2x zero-dilated
    input padded by (k-1-p)=2 with the flipped, in/out-swapped kernel.
    Built with a single lax.pad (interior padding) — no zeros+scatter."""
    zero = jnp.zeros((), x.dtype)
    return lax.pad(x, zero, ((0, 0, 0), (0, 0, 0), (2, 2, 1), (2, 2, 1)))


def _im2col_t(xp, kh, kw, oh, ow):
    """(N, C, Hp, Wp) -> patches^T (N, C*kh*kw, oh*ow); row order (c, ky, kx)."""
    n, c = xp.shape[:2]
    cols = [xp[:, :, ky:ky + oh, kx:kx + ow]
            for ky in range(kh) for kx in range(kw)]
    return jnp.stack(cols, axis=2).reshape(n, c * kh * kw, oh * ow)


# ----------------------------------------------------------------------------
# Layer wrappers
# ----------------------------------------------------------------------------
def _deconv4x4_s2_in_relu(x, w_t, gamma, beta):
    """ConvTranspose2d(Cin,Cout,4,2,1,bias=False) + InstanceNorm2d(affine) + ReLU.

    x: (N, Cin, H, W) NCHW;  w_t in torch layout (Cin, Cout, 4, 4).
    """
    N, Cin, H, W = x.shape
    Cout = w_t.shape[1]
    OH, OW = 2 * H, 2 * W
    M, K = OH * OW, Cin * 16

    xb = x.astype(jnp.bfloat16)                                  # MXU-native dtype
    pT = _im2col_t(_dilated_padded(xb), 4, 4, OH, OW)            # (N, K, M)
    # equivalent forward-conv weight: swap in/out channels, flip spatially
    wmat = (jnp.transpose(w_t, (1, 0, 2, 3))[:, :, ::-1, ::-1]
            .reshape(Cout, K).astype(jnp.bfloat16))              # (Cout, K)
    g = gamma.reshape(Cout, 1).astype(jnp.float32)
    b = beta.reshape(Cout, 1).astype(jnp.float32)

    out = pl.pallas_call(
        _deconv_in_relu_kernel,
        out_shape=jax.ShapeDtypeStruct((N, Cout, M), jnp.float32),
        grid=(N,),
        in_specs=[
            pl.BlockSpec((Cout, K), lambda n: (0, 0)),
            pl.BlockSpec((1, K, M), lambda n: (n, 0, 0)),
            pl.BlockSpec((Cout, 1), lambda n: (0, 0)),
            pl.BlockSpec((Cout, 1), lambda n: (0, 0)),
        ],
        out_specs=pl.BlockSpec((1, Cout, M), lambda n: (n, 0, 0)),
        compiler_params=pltpu.CompilerParams(dimension_semantics=("parallel",)),
    )(wmat, pT, g, b)
    return out.reshape(N, Cout, OH, OW)                          # NCHW, no transpose


def _conv7x7_s1_p3_tanh(x, w):
    """Conv2d(Cin, 3, 7, stride=1, padding=3, bias=False) + Tanh.  w: (3,Cin,7,7)."""
    N, Cin, H, W = x.shape
    Cout = w.shape[0]
    M, K = H * W, Cin * 49
    Kp = ((K + 127) // 128) * 128          # pad ragged contraction (196 -> 256)

    xb = jnp.pad(x.astype(jnp.bfloat16), ((0, 0), (0, 0), (3, 3), (3, 3)))
    pT = _im2col_t(xb, 7, 7, H, W)                               # (N, K, M)
    pT = jnp.pad(pT, ((0, 0), (0, Kp - K), (0, 0)))
    wmat = jnp.pad(w.reshape(Cout, K), ((0, 0), (0, Kp - K))).astype(jnp.bfloat16)

    out = pl.pallas_call(
        _conv_tanh_kernel,
        out_shape=jax.ShapeDtypeStruct((N, Cout, M), jnp.float32),
        grid=(N,),
        in_specs=[
            pl.BlockSpec((Cout, Kp), lambda n: (0, 0)),
            pl.BlockSpec((1, Kp, M), lambda n: (n, 0, 0)),
        ],
        out_specs=pl.BlockSpec((1, Cout, M), lambda n: (n, 0, 0)),
        compiler_params=pltpu.CompilerParams(dimension_semantics=("parallel",)),
    )(wmat, pT)
    return out.reshape(N, Cout, H, W)


# ----------------------------------------------------------------------------
# Model: ImageGeneratorR forward
# ----------------------------------------------------------------------------
def init_params(key, conv_dim=4, num_upsample=2):
    curr_dim = conv_dim * (2 ** num_upsample)
    params = {"ups": [], "w_out": None}
    for _ in range(num_upsample):
        key, k1, k2, k3 = jax.random.split(key, 4)
        w_t = 0.05 * jax.random.normal(k1, (curr_dim, curr_dim // 2, 4, 4), jnp.float32)
        gamma = 1.0 + 0.1 * jax.random.normal(k2, (curr_dim // 2,), jnp.float32)
        beta = 0.1 * jax.random.normal(k3, (curr_dim // 2,), jnp.float32)
        params["ups"].append((w_t, gamma, beta))
        curr_dim //= 2
    key, k4 = jax.random.split(key)
    params["w_out"] = 0.05 * jax.random.normal(k4, (3, curr_dim, 7, 7), jnp.float32)
    return params


def image_generator_r_forward(x, params):
    h = x
    for w_t, gamma, beta in params["ups"]:
        h = _deconv4x4_s2_in_relu(h, w_t, gamma, beta)
    return _conv7x7_s1_p3_tanh(h, params["w_out"])


# pure-JAX references for sanity checking.
# mxu_bf16=True mirrors the kernel's numerical policy (bf16 MXU operands,
# f32 accumulation) so it can be compared like-for-like at a tight tolerance.
def reference_forward(x, params, *, mxu_bf16=False):
    dn = ("NCHW", "OIHW", "NCHW")
    cast = (lambda a: a.astype(jnp.bfloat16)) if mxu_bf16 else (lambda a: a)
    prec = None if mxu_bf16 else lax.Precision.HIGHEST
    h = x
    for w_t, gamma, beta in params["ups"]:
        wc = jnp.transpose(w_t, (1, 0, 2, 3))[:, :, ::-1, ::-1]
        h = lax.conv_general_dilated(
            cast(h), cast(wc), window_strides=(1, 1), padding=((2, 2), (2, 2)),
            lhs_dilation=(2, 2), dimension_numbers=dn,
            preferred_element_type=jnp.float32, precision=prec)
        mean = h.mean(axis=(2, 3), keepdims=True)
        var = ((h - mean) ** 2).mean(axis=(2, 3), keepdims=True)
        h = (h - mean) * lax.rsqrt(var + 1e-5)
        h = h * gamma[None, :, None, None] + beta[None, :, None, None]
        h = jnp.maximum(h, 0.0)
    h = lax.conv_general_dilated(
        cast(h), cast(params["w_out"]), window_strides=(1, 1),
        padding=((3, 3), (3, 3)), dimension_numbers=dn,
        preferred_element_type=jnp.float32, precision=prec)
    return jnp.tanh(h)


if __name__ == "__main__":
    key = jax.random.PRNGKey(0)
    kp, kx = jax.random.split(key)

    conv_dim, num_upsample = 4, 2        # curr_dim = 16
    params = init_params(kp, conv_dim=conv_dim, num_upsample=num_upsample)

    # NCHW input: batch=2, channels=16, spatial=8x8 -> output (2, 3, 32, 32)
    x = jax.random.normal(kx, (2, 16, 8, 8), jnp.float32)

    out = jax.block_until_ready(jax.jit(image_generator_r_forward)(x, params))
    assert out.shape == (2, 3, 32, 32), out.shape

    # like-for-like reference (same bf16-operand / f32-accumulate MXU policy)
    ref_bf16 = jax.block_until_ready(reference_forward(x, params, mxu_bf16=True))
    err = float(jnp.max(jnp.abs(out - ref_bf16)))
    assert err < 2e-3, f"mismatch vs like-for-like reference: {err}"

    # full-f32 HIGHEST reference: deliberately loose bound (kernel feeds the MXU
    # bf16 per the perf guidance; differences are pure dtype rounding).
    ref_f32 = jax.block_until_ready(reference_forward(x, params, mxu_bf16=False))
    err32 = float(jnp.max(jnp.abs(out - ref_f32)))
    assert err32 < 1e-1, f"gross mismatch vs f32 reference: {err32}"

    print("KERNEL_OK")
</pallas_src>

<mosaic_0001>
module attributes {stable_mosaic.version = 11 : i64} {
  func.func @_deconv_in_relu_kernel(%arg0: i32, %arg1: memref<8x256xbf16, #tpu.memory_space<vmem>>, %arg2: memref<1x256x256xbf16, #tpu.memory_space<vmem>>, %arg3: memref<8x1xf32, #tpu.memory_space<vmem>>, %arg4: memref<8x1xf32, #tpu.memory_space<vmem>>, %arg5: memref<1x8x256xf32, #tpu.memory_space<vmem>>) attributes {dimension_semantics = [#tpu.dimension_semantics<parallel>], iteration_bounds = array<i64: 2>, scalar_prefetch = 0 : i64, scratch_operands = 0 : i64, tpu.core_type = #tpu.core_type<tc>, window_params = [{pipeline_mode = #tpu.pipeline_mode<synchronous>, transform_indices = @transform_0, window_bounds = array<i64: 8, 256>}, {transform_indices = @transform_1, window_bounds = array<i64: 1, 256, 256>}, {pipeline_mode = #tpu.pipeline_mode<synchronous>, transform_indices = @transform_2, window_bounds = array<i64: 8, 1>}, {pipeline_mode = #tpu.pipeline_mode<synchronous>, transform_indices = @transform_3, window_bounds = array<i64: 8, 1>}, {transform_indices = @transform_4, window_bounds = array<i64: 1, 8, 256>}]} {
    %c0 = arith.constant 0 : index
    %c0_0 = arith.constant 0 : index
    %0 = vector.load %arg1[%c0, %c0_0] : memref<8x256xbf16, #tpu.memory_space<vmem>>, vector<8x256xbf16>
    %c0_1 = arith.constant 0 : index
    %c0_2 = arith.constant 0 : index
    %c0_3 = arith.constant 0 : index
    %1 = vector.load %arg2[%c0_1, %c0_2, %c0_3] : memref<1x256x256xbf16, #tpu.memory_space<vmem>>, vector<1x256x256xbf16>
    %2 = vector.shape_cast %1 : vector<1x256x256xbf16> to vector<256x256xbf16>
    %cst = arith.constant dense<0.000000e+00> : vector<8x256xf32>
    %3 = tpu.matmul %0, %2, %cst {dimension_numbers = #tpu.dot_dimension_numbers<[1], [0], [0], [1], [0, 0, 1, 1], [], []>} : vector<8x256xbf16>, vector<256x256xbf16>, vector<8x256xf32> -> vector<8x256xf32>
    %cst_4 = arith.constant dense<0.000000e+00> : vector<8xf32>
    %4 = vector.multi_reduction <add>, %3, %cst_4 [1] : vector<8x256xf32> to vector<8xf32>
    %5 = vector.shape_cast %4 : vector<8xf32> to vector<8x1xf32>
    %cst_5 = arith.constant 2.560000e+02 : f32
    %6 = vector.broadcast %cst_5 : f32 to vector<8x1xf32>
    %7 = arith.divf %5, %6 : vector<8x1xf32>
    %8 = vector.broadcast %7 : vector<8x1xf32> to vector<8x256xf32>
    %9 = arith.subf %3, %8 : vector<8x256xf32>
    %10 = arith.mulf %9, %9 : vector<8x256xf32>
    %cst_6 = arith.constant dense<0.000000e+00> : vector<8xf32>
    %11 = vector.multi_reduction <add>, %10, %cst_6 [1] : vector<8x256xf32> to vector<8xf32>
    %12 = vector.shape_cast %11 : vector<8xf32> to vector<8x1xf32>
    %cst_7 = arith.constant 2.560000e+02 : f32
    %13 = vector.broadcast %cst_7 : f32 to vector<8x1xf32>
    %14 = arith.divf %12, %13 : vector<8x1xf32>
    %15 = vector.broadcast %7 : vector<8x1xf32> to vector<8x256xf32>
    %16 = arith.subf %3, %15 : vector<8x256xf32>
    %cst_8 = arith.constant 9.99999974E-6 : f32
    %17 = vector.broadcast %cst_8 : f32 to vector<8x1xf32>
    %18 = arith.addf %14, %17 : vector<8x1xf32>
    %19 = math.rsqrt %18 : vector<8x1xf32>
    %20 = vector.broadcast %19 : vector<8x1xf32> to vector<8x256xf32>
    %21 = arith.mulf %16, %20 : vector<8x256xf32>
    %c0_9 = arith.constant 0 : index
    %c0_10 = arith.constant 0 : index
    %22 = vector.load %arg3[%c0_9, %c0_10] : memref<8x1xf32, #tpu.memory_space<vmem>>, vector<8x1xf32>
    %23 = vector.broadcast %22 : vector<8x1xf32> to vector<8x256xf32>
    %24 = arith.mulf %21, %23 : vector<8x256xf32>
    %c0_11 = arith.constant 0 : index
    %c0_12 = arith.constant 0 : index
    %25 = vector.load %arg4[%c0_11, %c0_12] : memref<8x1xf32, #tpu.memory_space<vmem>>, vector<8x1xf32>
    %26 = vector.broadcast %25 : vector<8x1xf32> to vector<8x256xf32>
    %27 = arith.addf %24, %26 : vector<8x256xf32>
    %cst_13 = arith.constant 0.000000e+00 : f32
    %28 = vector.broadcast %cst_13 : f32 to vector<8x256xf32>
    %29 = arith.maximumf %27, %28 : vector<8x256xf32>
    %c0_14 = arith.constant 0 : index
    %c0_15 = arith.constant 0 : index
    %c0_16 = arith.constant 0 : index
    %30 = vector.load %arg5[%c0_14, %c0_15, %c0_16] : memref<1x8x256xf32, #tpu.memory_space<vmem>>, vector<1x8x256xf32>
    %31 = vector.shape_cast %30 : vector<1x8x256xf32> to vector<8x256xf32>
    %32 = vector.shape_cast %29 : vector<8x256xf32> to vector<1x8x256xf32>
    tpu.vector_store %arg5[%c0_14, %c0_15, %c0_16], %32 {strides = array<i32>} : memref<1x8x256xf32, #tpu.memory_space<vmem>>, vector<1x8x256xf32>,
    return
  }
  func.func @transform_0(%arg0: i32) -> (i32, i32) {
    %c0_i32 = arith.constant 0 : i32
    %c0_i32_0 = arith.constant 0 : i32
    %c0_i32_1 = arith.constant 0 : i32
    return %c0_i32, %c0_i32_0 : i32, i32
  }
  func.func @transform_1(%arg0: i32) -> (i32, i32, i32) {
    %c0_i32 = arith.constant 0 : i32
    %c0_i32_0 = arith.constant 0 : i32
    %c0_i32_1 = arith.constant 0 : i32
    return %arg0, %c0_i32, %c0_i32_0 : i32, i32, i32
  }
  func.func @transform_2(%arg0: i32) -> (i32, i32) {
    %c0_i32 = arith.constant 0 : i32
    %c0_i32_0 = arith.constant 0 : i32
    %c0_i32_1 = arith.constant 0 : i32
    return %c0_i32, %c0_i32_0 : i32, i32
  }
  func.func @transform_3(%arg0: i32) -> (i32, i32) {
    %c0_i32 = arith.constant 0 : i32
    %c0_i32_0 = arith.constant 0 : i32
    %c0_i32_1 = arith.constant 0 : i32
    return %c0_i32, %c0_i32_0 : i32, i32
  }
  func.func @transform_4(%arg0: i32) -> (i32, i32, i32) {
    %c0_i32 = arith.constant 0 : i32
    %c0_i32_0 = arith.constant 0 : i32
    %c0_i32_1 = arith.constant 0 : i32
    return %arg0, %c0_i32, %c0_i32_0 : i32, i32, i32
  }
}

module attributes {stable_mosaic.version = 11 : i64} {
  func.func @_deconv_in_relu_kernel(%arg0: i32, %arg1: memref<4x128xbf16, #tpu.memory_space<vmem>>, %arg2: memref<1x128x1024xbf16, #tpu.memory_space<vmem>>, %arg3: memref<4x1xf32, #tpu.memory_space<vmem>>, %arg4: memref<4x1xf32, #tpu.memory_space<vmem>>, %arg5: memref<1x4x1024xf32, #tpu.memory_space<vmem>>) attributes {dimension_semantics = [#tpu.dimension_semantics<parallel>], iteration_bounds = array<i64: 2>, scalar_prefetch = 0 : i64, scratch_operands = 0 : i64, tpu.core_type = #tpu.core_type<tc>, window_params = [{pipeline_mode = #tpu.pipeline_mode<synchronous>, transform_indices = @transform_0, window_bounds = array<i64: 4, 128>}, {transform_indices = @transform_1, window_bounds = array<i64: 1, 128, 1024>}, {pipeline_mode = #tpu.pipeline_mode<synchronous>, transform_indices = @transform_2, window_bounds = array<i64: 4, 1>}, {pipeline_mode = #tpu.pipeline_mode<synchronous>, transform_indices = @transform_3, window_bounds = array<i64: 4, 1>}, {transform_indices = @transform_4, window_bounds = array<i64: 1, 4, 1024>}]} {
    %c0 = arith.constant 0 : index
    %c0_0 = arith.constant 0 : index
    %0 = vector.load %arg1[%c0, %c0_0] : memref<4x128xbf16, #tpu.memory_space<vmem>>, vector<4x128xbf16>
    %c0_1 = arith.constant 0 : index
    %c0_2 = arith.constant 0 : index
    %c0_3 = arith.constant 0 : index
    %1 = vector.load %arg2[%c0_1, %c0_2, %c0_3] : memref<1x128x1024xbf16, #tpu.memory_space<vmem>>, vector<1x128x1024xbf16>
    %2 = vector.shape_cast %1 : vector<1x128x1024xbf16> to vector<128x1024xbf16>
    %cst = arith.constant dense<0.000000e+00> : vector<4x1024xf32>
    %3 = tpu.matmul %0, %2, %cst {dimension_numbers = #tpu.dot_dimension_numbers<[1], [0], [0], [1], [0, 0, 1, 1], [], []>} : vector<4x128xbf16>, vector<128x1024xbf16>, vector<4x1024xf32> -> vector<4x1024xf32>
    %cst_4 = arith.constant dense<0.000000e+00> : vector<4xf32>
    %4 = vector.multi_reduction <add>, %3, %cst_4 [1] : vector<4x1024xf32> to vector<4xf32>
    %5 = vector.shape_cast %4 : vector<4xf32> to vector<4x1xf32>
    %cst_5 = arith.constant 1.024000e+03 : f32
    %6 = vector.broadcast %cst_5 : f32 to vector<4x1xf32>
    %7 = arith.divf %5, %6 : vector<4x1xf32>
    %8 = vector.broadcast %7 : vector<4x1xf32> to vector<4x1024xf32>
    %9 = arith.subf %3, %8 : vector<4x1024xf32>
    %10 = arith.mulf %9, %9 : vector<4x1024xf32>
    %cst_6 = arith.constant dense<0.000000e+00> : vector<4xf32>
    %11 = vector.multi_reduction <add>, %10, %cst_6 [1] : vector<4x1024xf32> to vector<4xf32>
    %12 = vector.shape_cast %11 : vector<4xf32> to vector<4x1xf32>
    %cst_7 = arith.constant 1.024000e+03 : f32
    %13 = vector.broadcast %cst_7 : f32 to vector<4x1xf32>
    %14 = arith.divf %12, %13 : vector<4x1xf32>
    %15 = vector.broadcast %7 : vector<4x1xf32> to vector<4x1024xf32>
    %16 = arith.subf %3, %15 : vector<4x1024xf32>
    %cst_8 = arith.constant 9.99999974E-6 : f32
    %17 = vector.broadcast %cst_8 : f32 to vector<4x1xf32>
    %18 = arith.addf %14, %17 : vector<4x1xf32>
    %19 = math.rsqrt %18 : vector<4x1xf32>
    %20 = vector.broadcast %19 : vector<4x1xf32> to vector<4x1024xf32>
    %21 = arith.mulf %16, %20 : vector<4x1024xf32>
    %c0_9 = arith.constant 0 : index
    %c0_10 = arith.constant 0 : index
    %22 = vector.load %arg3[%c0_9, %c0_10] : memref<4x1xf32, #tpu.memory_space<vmem>>, vector<4x1xf32>
    %23 = vector.broadcast %22 : vector<4x1xf32> to vector<4x1024xf32>
    %24 = arith.mulf %21, %23 : vector<4x1024xf32>
    %c0_11 = arith.constant 0 : index
    %c0_12 = arith.constant 0 : index
    %25 = vector.load %arg4[%c0_11, %c0_12] : memref<4x1xf32, #tpu.memory_space<vmem>>, vector<4x1xf32>
    %26 = vector.broadcast %25 : vector<4x1xf32> to vector<4x1024xf32>
    %27 = arith.addf %24, %26 : vector<4x1024xf32>
    %cst_13 = arith.constant 0.000000e+00 : f32
    %28 = vector.broadcast %cst_13 : f32 to vector<4x1024xf32>
    %29 = arith.maximumf %27, %28 : vector<4x1024xf32>
    %c0_14 = arith.constant 0 : index
    %c0_15 = arith.constant 0 : index
    %c0_16 = arith.constant 0 : index
    %30 = vector.load %arg5[%c0_14, %c0_15, %c0_16] : memref<1x4x1024xf32, #tpu.memory_space<vmem>>, vector<1x4x1024xf32>
    %31 = vector.shape_cast %30 : vector<1x4x1024xf32> to vector<4x1024xf32>
    %32 = vector.shape_cast %29 : vector<4x1024xf32> to vector<1x4x1024xf32>
    tpu.vector_store %arg5[%c0_14, %c0_15, %c0_16], %32 {strides = array<i32>} : memref<1x4x1024xf32, #tpu.memory_space<vmem>>, vector<1x4x1024xf32>,
    return
  }
  func.func @transform_0(%arg0: i32) -> (i32, i32) {
    %c0_i32 = arith.constant 0 : i32
    %c0_i32_0 = arith.constant 0 : i32
    %c0_i32_1 = arith.constant 0 : i32
    return %c0_i32, %c0_i32_0 : i32, i32
  }
  func.func @transform_1(%arg0: i32) -> (i32, i32, i32) {
    %c0_i32 = arith.constant 0 : i32
    %c0_i32_0 = arith.constant 0 : i32
    %c0_i32_1 = arith.constant 0 : i32
    return %arg0, %c0_i32, %c0_i32_0 : i32, i32, i32
  }
  func.func @transform_2(%arg0: i32) -> (i32, i32) {
    %c0_i32 = arith.constant 0 : i32
    %c0_i32_0 = arith.constant 0 : i32
    %c0_i32_1 = arith.constant 0 : i32
    return %c0_i32, %c0_i32_0 : i32, i32
  }
  func.func @transform_3(%arg0: i32) -> (i32, i32) {
    %c0_i32 = arith.constant 0 : i32
    %c0_i32_0 = arith.constant 0 : i32
    %c0_i32_1 = arith.constant 0 : i32
    return %c0_i32, %c0_i32_0 : i32, i32
  }
  func.func @transform_4(%arg0: i32) -> (i32, i32, i32) {
    %c0_i32 = arith.constant 0 : i32
    %c0_i32_0 = arith.constant 0 : i32
    %c0_i32_1 = arith.constant 0 : i32
    return %arg0, %c0_i32, %c0_i32_0 : i32, i32, i32
  }
}

module attributes {stable_mosaic.version = 11 : i64} {
  func.func @_conv_tanh_kernel(%arg0: i32, %arg1: memref<3x256xbf16, #tpu.memory_space<vmem>>, %arg2: memref<1x256x1024xbf16, #tpu.memory_space<vmem>>, %arg3: memref<1x3x1024xf32, #tpu.memory_space<vmem>>) attributes {dimension_semantics = [#tpu.dimension_semantics<parallel>], iteration_bounds = array<i64: 2>, scalar_prefetch = 0 : i64, scratch_operands = 0 : i64, tpu.core_type = #tpu.core_type<tc>, window_params = [{pipeline_mode = #tpu.pipeline_mode<synchronous>, transform_indices = @transform_0, window_bounds = array<i64: 3, 256>}, {transform_indices = @transform_1, window_bounds = array<i64: 1, 256, 1024>}, {transform_indices = @transform_2, window_bounds = array<i64: 1, 3, 1024>}]} {
    %c0 = arith.constant 0 : index
    %c0_0 = arith.constant 0 : index
    %0 = vector.load %arg1[%c0, %c0_0] : memref<3x256xbf16, #tpu.memory_space<vmem>>, vector<3x256xbf16>
    %c0_1 = arith.constant 0 : index
    %c0_2 = arith.constant 0 : index
    %c0_3 = arith.constant 0 : index
    %1 = vector.load %arg2[%c0_1, %c0_2, %c0_3] : memref<1x256x1024xbf16, #tpu.memory_space<vmem>>, vector<1x256x1024xbf16>
    %2 = vector.shape_cast %1 : vector<1x256x1024xbf16> to vector<256x1024xbf16>
    %cst = arith.constant dense<0.000000e+00> : vector<3x1024xf32>
    %3 = tpu.matmul %0, %2, %cst {dimension_numbers = #tpu.dot_dimension_numbers<[1], [0], [0], [1], [0, 0, 1, 1], [], []>} : vector<3x256xbf16>, vector<256x1024xbf16>, vector<3x1024xf32> -> vector<3x1024xf32>
    %4 = math.tanh %3 : vector<3x1024xf32>
    %c0_4 = arith.constant 0 : index
    %c0_5 = arith.constant 0 : index
    %c0_6 = arith.constant 0 : index
    %5 = vector.load %arg3[%c0_4, %c0_5, %c0_6] : memref<1x3x1024xf32, #tpu.memory_space<vmem>>, vector<1x3x1024xf32>
    %6 = vector.shape_cast %5 : vector<1x3x1024xf32> to vector<3x1024xf32>
    %7 = vector.shape_cast %4 : vector<3x1024xf32> to vector<1x3x1024xf32>
    tpu.vector_store %arg3[%c0_4, %c0_5, %c0_6], %7 {strides = array<i32>} : memref<1x3x1024xf32, #tpu.memory_space<vmem>>, vector<1x3x1024xf32>,
    return
  }
  func.func @transform_0(%arg0: i32) -> (i32, i32) {
    %c0_i32 = arith.constant 0 : i32
    %c0_i32_0 = arith.constant 0 : i32
    %c0_i32_1 = arith.constant 0 : i32
    return %c0_i32, %c0_i32_0 : i32, i32
  }
  func.func @transform_1(%arg0: i32) -> (i32, i32, i32) {
    %c0_i32 = arith.constant 0 : i32
    %c0_i32_0 = arith.constant 0 : i32
    %c0_i32_1 = arith.constant 0 : i32
    return %arg0, %c0_i32, %c0_i32_0 : i32, i32, i32
  }
  func.func @transform_2(%arg0: i32) -> (i32, i32, i32) {
    %c0_i32 = arith.constant 0 : i32
    %c0_i32_0 = arith.constant 0 : i32
    %c0_i32_1 = arith.constant 0 : i32
    return %arg0, %c0_i32, %c0_i32_0 : i32, i32, i32
  }
}

</mosaic_0001>

<bundles_post_ra>
// kernel: image_generator_r_forward.3
= control target key start
LH: loop header
LB: loop body
LE: loop exit
PB: predicated region body
PF: predicated region fallthrough
CT: control target
= control target key end

     0   :  { %s675_s15 = smov 0   ;;  %s745_s0 = inlined_call_operand.vmem [shape: bf16[8,256], index: 0, kind: input, shape index: {}]   ;;  %s746_s1 = inlined_call_operand.vmem [shape: bf16[2,256,256], index: 1, kind: input, shape index: {}]   ;;  %s747_s2 = inlined_call_operand.vmem [shape: f32[8,1], index: 2, kind: input, shape index: {}]   ;;  %s748_s3 = inlined_call_operand.vmem [shape: f32[8,1], index: 3, kind: input, shape index: {}]   ;;  %s749_s4 = inlined_call_operand.vmem [shape: f32[2,8,256], index: 4, kind: output, shape index: {}]  }
   0x1 LB: > { %s531_s16 = sadd.s32 4294967295, %s647_s15   ;;  %p535_p0 = scmp.ge.s32.totalorder %s647_s15, 1  ;;  %s647_s15 = sphi %s675_s15, %s14_s15  }
   0x2   : > { %p162_p1 = scmp.lt.s32.totalorder %s647_s15, 3 }
   0x4   : > { %p163_p2 = pnand %p535_p0, %p162_p1 }
   0x5   : > { %p188_p3 = scmp.lt.s32.totalorder (!%p163_p2), %s531_s16, 1  ;;  %v686_v0 = vld [vmem:[%s745_s0] sm:$0xff] (!%p163_p2)  ;;  %v649_v41 = vmov (!%p163_p2), 0  }
   0x6   : > { %166 = sbr.rel (%p163_p2) target bundleno = 612 (0x264), region = 36  ;;  %v541_v1 = vcombine.high (!%p163_p2), %v686_v0, %v686_v0  ;;  %v540_v34 = vcombine.low (!%p163_p2), %v686_v0, %v686_v0  ;;  %v456_v40 = vld [vmem:[%s747_s2] sm:$0xff] (!%p163_p2)  ;;  %587 = vset.pattern.permute.xlu1 (!%p163_p2), %v649_v41  ;;  %588 = vset.pattern.permute.xlu0 (!%p163_p2), %v649_v41 }
   0x7   : > { %459 = vperm.xlu1 (!%p163_p2), %587, %v456_v40   ;;  %v464_v42 = vld [vmem:[%s748_s3] sm:$0xff] (!%p163_p2) }
   0x8   : > { %430 = vmatprep.mubr.bf16.mxu0 (!%p163_p2), %v541_v1 }
   0xb   : > { %467 = vperm.xlu1 (!%p163_p2), %587, %v464_v42  }
   0xd   : > { %s751_s16 = smov (!%p188_p3, %s531_s16), 1 }
   0xe   : > { %s576_s19 = sshll.u32 %s751_s16, 8  ;;  %s577_s27 = sshll.u32 %s751_s16, 4 }
   0xf   : > { %s696_s22 = scalar_lea.vmem %s746_s1, %s576_s19  ;;  %s197_s30 = scalar_lea.vmem %s749_s4, %s577_s27 }
  0x10   : > { %v589_v2 = vld [vmem:[%s696_s22 + $0x4] ss:$8 sps:$4 sm:$0xff]   ;;  %v591_v3 = vld [vmem:[%s696_s22] ss:$8 sps:$4 sm:$0xff]   ;;  %v592_v4 = vld [vmem:[%s696_s22 + $0x14] ss:$8 sps:$4 sm:$0xff]  }
  0x11   : > { %398 = vmatprep.subr.bf16.mxu0 %v589_v2  ;;  %v594_v5 = vld [vmem:[%s696_s22 + $0x10] ss:$8 sps:$4 sm:$0xff]   ;;  %v595_v6 = vld [vmem:[%s696_s22 + $0x24] ss:$8 sps:$4 sm:$0xff]   ;;  %v597_v7 = vld [vmem:[%s696_s22 + $0x20] ss:$8 sps:$4 sm:$0xff]  }
  0x12   : > { %399 = vmatpush1.bf16.msra.mxu0 %v591_v3  ;;  %v598_v8 = vld [vmem:[%s696_s22 + $0x34] ss:$8 sps:$4 sm:$0xff]   ;;  %v600_v9 = vld [vmem:[%s696_s22 + $0x30] ss:$8 sps:$4 sm:$0xff]   ;;  %v601_v10 = vld [vmem:[%s696_s22 + $0x44] ss:$8 sps:$4 sm:$0xff]  }
  0x13   : > { %400 = vmatprep.subr.bf16.mxu0 %v592_v4  ;;  %v603_v11 = vld [vmem:[%s696_s22 + $0x40] ss:$8 sps:$4 sm:$0xff]   ;;  %v604_v12 = vld [vmem:[%s696_s22 + $0x54] ss:$8 sps:$4 sm:$0xff]   ;;  %v606_v13 = vld [vmem:[%s696_s22 + $0x50] ss:$8 sps:$4 sm:$0xff]  }
  0x14   : > { %v607_v14 = vld [vmem:[%s696_s22 + $0x64] ss:$8 sps:$4 sm:$0xff]   ;;  %v609_v15 = vld [vmem:[%s696_s22 + $0x60] ss:$8 sps:$4 sm:$0xff]   ;;  %v610_v16 = vld [vmem:[%s696_s22 + $0x74] ss:$8 sps:$4 sm:$0xff]  }
  0x15   : > { %v612_v17 = vld [vmem:[%s696_s22 + $0x70] ss:$8 sps:$4 sm:$0xff]   ;;  %v613_v18 = vld [vmem:[%s696_s22 + $0x84] ss:$8 sps:$4 sm:$0xff]   ;;  %v615_v19 = vld [vmem:[%s696_s22 + $0x80] ss:$8 sps:$4 sm:$0xff]  }
  0x16   : > { %401 = vmatpush1.bf16.msra.mxu0 %v594_v5  ;;  %v616_v20 = vld [vmem:[%s696_s22 + $0x94] ss:$8 sps:$4 sm:$0xff]   ;;  %v618_v21 = vld [vmem:[%s696_s22 + $0x90] ss:$8 sps:$4 sm:$0xff]   ;;  %v619_v22 = vld [vmem:[%s696_s22 + $0xa4] ss:$8 sps:$4 sm:$0xff]  }
  0x17   : > { %402 = vmatprep.subr.bf16.mxu0 %v595_v6  ;;  %v621_v23 = vld [vmem:[%s696_s22 + $0xa0] ss:$8 sps:$4 sm:$0xff]   ;;  %v622_v24 = vld [vmem:[%s696_s22 + $0xb4] ss:$8 sps:$4 sm:$0xff]   ;;  %v624_v25 = vld [vmem:[%s696_s22 + $0xb0] ss:$8 sps:$4 sm:$0xff]  }
  0x18   : > { %v625_v26 = vld [vmem:[%s696_s22 + $0xc4] ss:$8 sps:$4 sm:$0xff]   ;;  %v627_v27 = vld [vmem:[%s696_s22 + $0xc0] ss:$8 sps:$4 sm:$0xff]   ;;  %v628_v28 = vld [vmem:[%s696_s22 + $0xd4] ss:$8 sps:$4 sm:$0xff]  }
  0x19   : > { %v630_v29 = vld [vmem:[%s696_s22 + $0xd0] ss:$8 sps:$4 sm:$0xff]   ;;  %v631_v30 = vld [vmem:[%s696_s22 + $0xe4] ss:$8 sps:$4 sm:$0xff]   ;;  %v633_v31 = vld [vmem:[%s696_s22 + $0xe0] ss:$8 sps:$4 sm:$0xff]  }
  0x1a   : > { %403 = vmatpush1.bf16.msra.mxu0 %v597_v7  ;;  %v634_v32 = vld [vmem:[%s696_s22 + $0xf4] ss:$8 sps:$4 sm:$0xff]   ;;  %v636_v33 = vld [vmem:[%s696_s22 + $0xf0] ss:$8 sps:$4 sm:$0xff]  }
  0x1b   : > { %404 = vmatprep.subr.bf16.mxu0 %v598_v8 }
  0x1e   : > { %405 = vmatpush1.bf16.msra.mxu0 %v600_v9 }
  0x1f   : > { %406 = vmatprep.subr.bf16.mxu0 %v601_v10 }
  0x22   : > { %407 = vmatpush1.bf16.msra.mxu0 %v603_v11 }
  0x23   : > { %408 = vmatprep.subr.bf16.mxu0 %v604_v12 }
  0x26   : > { %409 = vmatpush1.bf16.msra.mxu0 %v606_v13 }
  0x27   : > { %410 = vmatprep.subr.bf16.mxu0 %v607_v14 }
  0x2a   : > { %411 = vmatpush1.bf16.msra.mxu0 %v609_v15 }
  0x2b   : > { %412 = vmatprep.subr.bf16.mxu0 %v610_v16 }
  0x2e   : > { %413 = vmatpush1.bf16.msra.mxu0 %v612_v17 }
  0x2f   : > { %414 = vmatprep.subr.bf16.mxu0 %v613_v18 }
  0x32   : > { %415 = vmatpush1.bf16.msra.mxu0 %v615_v19 }
  0x33   : > { %416 = vmatprep.subr.bf16.mxu0 %v616_v20 }
  0x36   : > { %417 = vmatpush1.bf16.msra.mxu0 %v618_v21 }
  0x37   : > { %418 = vmatprep.subr.bf16.mxu0 %v619_v22 }
  0x3a   : > { %419 = vmatpush1.bf16.msra.mxu0 %v621_v23 }
  0x3b   : > { %420 = vmatprep.subr.bf16.mxu0 %v622_v24 }
  0x3e   : > { %421 = vmatpush1.bf16.msra.mxu0 %v624_v25 }
  0x3f   : > { %422 = vmatprep.subr.bf16.mxu0 %v625_v26 }
  0x42   : > { %423 = vmatpush1.bf16.msra.mxu0 %v627_v27 }
  0x43   : > { %424 = vmatprep.subr.bf16.mxu0 %v628_v28 }
  0x46   : > { %425 = vmatpush1.bf16.msra.mxu0 %v630_v29 }
  0x47   : > { %426 = vmatprep.subr.bf16.mxu0 %v631_v30 }
  0x4a   : > { %427 = vmatpush1.bf16.msra.mxu0 %v633_v31 }
  0x4b   : > { %428 = vmatprep.subr.bf16.mxu0 %v634_v32 }
  0x4e   : > { %429 = vmatpush1.bf16.msra.mxu0 %v636_v33 }
  0x51   : > { %431 = vmatmul.mubr.bf16.vlgmr.msra.gmra.mrb[0].mxu0 %v540_v34 }
  0x86   : > { %v460_v53 = vpop.permute.xlu1 %459 }
  0x8a   : > { %v468_v59 = vpop.permute.xlu1 %467 }
 0x124   : > { %v432_v35 = vpop.f32.mrb[0].mxu0 }
 0x125   : > { %v434_v36 = vpop.f32.mrb[1].mxu0 }
 0x126   : > { %v436_v37 = vpop.f32.mrb[2].mxu0  ;;  %v439_v38 = vadd.f32 %v434_v36, %v432_v35 }
 0x127   : > { %v437_v39 = vpop.f32.mrb[3].mxu0 }
 0x128   : > { %440 = vadd.xlane.f32.xlu0 %v439_v38 }
 0x1b5   : > { %v441_v43 = vpop.xlane.xlu0 %440 }
 0x1b6   : > { %v443_v44 = vmul.f32 0.00390625, %v441_v43 }
 0x1b8   : > { %v444_v45 = vsub.f32 %v432_v35, %v443_v44  ;;  %v445_v46 = vsub.f32 %v434_v36, %v443_v44 }
 0x1ba   : > { %v446_v47 = vmul.f32 %v444_v45, %v444_v45  ;;  %v447_v48 = vmul.f32 %v445_v46, %v445_v46 }
 0x1bc   : > { %v448_v49 = vadd.f32 %v447_v48, %v446_v47 }
 0x1be   : > { %449 = vadd.xlane.f32.xlu0 %v448_v49 }
 0x24b   : > { %v450_v50 = vpop.xlane.xlu0 %449 }
 0x24c   : > { %v451_v51 = vmul.f32 0.00390625, %v450_v50 }
 0x24e   : > { %v452_v52 = vadd.f32 1e-05, %v451_v51 }
 0x250   : > { %639 = vrsqrt.f32 %v452_v52 }
 0x25a   : > { %v640_v54 = vpop.eup %639 }
 0x25b   : > { %v454_v55 = vmul.f32 %v640_v54, %v444_v45  ;;  %v455_v56 = vmul.f32 %v640_v54, %v445_v46 }
 0x25d   : > { %v462_v57 = vmul.f32 %v460_v53, %v454_v55  ;;  %v463_v58 = vmul.f32 %v460_v53, %v455_v56 }
 0x25f   : > { %v470_v60 = vadd.f32 %v468_v59, %v462_v57  ;;  %v471_v61 = vadd.f32 %v468_v59, %v463_v58 }
 0x261   : > { %v472_v62 = vmax.f32 %v470_v60, 0.0  ;;  %v473_v63 = vmax.f32 %v471_v61, 0.0 }
 0x263   : > { %474 = vst [vmem:[%s197_s30] sm:$0xff] %v472_v62  ;;  %475 = vst [vmem:[%s197_s30 + $0x8] sm:$0xff] %v473_v63 }
 0x264 PF: > { %s14_s15 = sadd.s32 1, %s647_s15  }
 0x265   : > { %p11_p4 = scmp.ge.s32.totalorder %s14_s15, 4  }
 0x267   :  { %13 = sbr.rel (!%p11_p4) target bundleno = 1 (0x1), region = 66 }

// kernel: image_generator_r_forward.4
= control target key start
LH: loop header
LB: loop body
LE: loop exit
PB: predicated region body
PF: predicated region fallthrough
CT: control target
= control target key end

     0   :  { %s1047_s15 = smov 0   ;;  %s1171_s0 = inlined_call_operand.vmem [shape: bf16[4,128], index: 0, kind: input, shape index: {}]   ;;  %s1172_s1 = inlined_call_operand.vmem [shape: bf16[2,128,1024], index: 1, kind: input, shape index: {}]   ;;  %s1173_s2 = inlined_call_operand.vmem [shape: f32[4,1], index: 2, kind: input, shape index: {}]   ;;  %s1174_s3 = inlined_call_operand.vmem [shape: f32[4,1], index: 3, kind: input, shape index: {}]   ;;  %s1175_s4 = inlined_call_operand.vmem [shape: f32[2,4,1024], index: 4, kind: output, shape index: {}]  }
   0x1 LB: > { %s923_s16 = sadd.s32 4294967295, %s1019_s15   ;;  %p927_p0 = scmp.ge.s32.totalorder %s1019_s15, 1  ;;  %s1019_s15 = sphi %s1047_s15, %s14_s15  }
   0x2   : > { %p162_p1 = scmp.lt.s32.totalorder %s1019_s15, 3 }
   0x4   : > { %p163_p2 = pnand %p927_p0, %p162_p1 }
   0x5   : > { %p188_p3 = scmp.lt.s32.totalorder (!%p163_p2), %s923_s16, 1  ;;  %v1021_v0 = vmov (!%p163_p2), 0   ;;  %vm748_vm0 = vcmask (!%p163_p2), 1043456  }
   0x6   : > { %166 = sbr.rel (%p163_p2) target bundleno = 637 (0x27d), region = 36  ;;  %616 = vmatprep.mubr.bf16.mxu0 (!%p163_p2), %v1021_v0  ;;  %657 = vmatprep.mubr.bf16.mxu1 (!%p163_p2), %v1021_v0 }
   0x7   : > { %1009 = vset.pattern.permute.xlu1 (!%p163_p2), %v1021_v0  ;;  %1010 = vset.pattern.permute.xlu0 (!%p163_p2), %v1021_v0 }
   0xd   : > { %s1177_s16 = smov (!%p188_p3, %s923_s16), 1 }
   0xe   : > { %s998_s17 = sshll.u32 %s1177_s16, 9  ;;  %s999_s27 = sshll.u32 %s1177_s16, 5 }
   0xf   : > { %s1065_s20 = scalar_lea.vmem %s1172_s1, %s998_s17  ;;  %s197_s30 = scalar_lea.vmem %s1175_s4, %s999_s27 }
  0x10   : > { %v200_v1 = vld [vmem:[%s1065_s20] sm:$0xff]  ;;  %v201_v3 = vld [vmem:[%s1065_s20 + $0x8] sm:$0xff]  ;;  %v202_v63 = vld [vmem:[%s1065_s20 + $0x10] sm:$0xff] }
  0x11   : > { %v204_v2 = vld [vmem:[%s1065_s20 + $0x20] sm:$0xff]  ;;  %v205_v6 = vld [vmem:[%s1065_s20 + $0x28] sm:$0xff] }
  0x12   : > { %v933_v4 = vcombine.high %v200_v1, %v204_v2  ;;  %v932_v5 = vcombine.low %v200_v1, %v204_v2  ;;  %v208_v7 = vld [vmem:[%s1065_s20 + $0x40] sm:$0xff]  ;;  %v935_v9 = vcombine.high %v201_v3, %v205_v6  ;;  %v934_v10 = vcombine.low %v201_v3, %v205_v6  ;;  %v209_v12 = vld [vmem:[%s1065_s20 + $0x48] sm:$0xff]  ;;  %v206_v1 = vld [vmem:[%s1065_s20 + $0x30] sm:$0xff] }
  0x13   : > { %v212_v8 = vld [vmem:[%s1065_s20 + $0x60] sm:$0xff]  ;;  %v213_v13 = vld [vmem:[%s1065_s20 + $0x68] sm:$0xff]  ;;  %v203_v2 = vld [vmem:[%s1065_s20 + $0x18] sm:$0xff]  ;;  %v937_v6 = vcombine.high %v202_v63, %v206_v1 }
  0x14   : > { %v941_v11 = vcombine.high %v208_v7, %v212_v8  ;;  %v216_v14 = vld [vmem:[%s1065_s20 + $0x80] sm:$0xff]  ;;  %584 = vmatprep.subr.bf16.mxu0 %v933_v4  ;;  %v943_v15 = vcombine.high %v209_v12, %v213_v13  ;;  %v217_v17 = vld [vmem:[%s1065_s20 + $0x88] sm:$0xff]  ;;  %625 = vmatprep.subr.bf16.mxu1 %v935_v9  ;;  %v940_v19 = vcombine.low %v208_v7, %v212_v8  ;;  %v207_v3 = vld [vmem:[%s1065_s20 + $0x38] sm:$0xff] }
  0x15   : > { %v220_v16 = vld [vmem:[%s1065_s20 + $0xa0] sm:$0xff]  ;;  %v221_v18 = vld [vmem:[%s1065_s20 + $0xa8] sm:$0xff]  ;;  %585 = vmatpush1.bf16.msra.mxu0 %v932_v5  ;;  %626 = vmatpush1.bf16.msra.mxu1 %v934_v10  ;;  %v942_v20 = vcombine.low %v209_v12, %v213_v13  ;;  %v939_v7 = vcombine.high %v203_v2, %v207_v3  ;;  %v210_v8 = vld [vmem:[%s1065_s20 + $0x50] sm:$0xff]  ;;  %v936_v13 = vcombine.low %v202_v63, %v206_v1 }
  0x16   : > { %586 = vmatprep.subr.bf16.mxu0 %v941_v11  ;;  %v949_v21 = vcombine.high %v216_v14, %v220_v16  ;;  %627 = vmatprep.subr.bf16.mxu1 %v943_v15  ;;  %v951_v22 = vcombine.high %v217_v17, %v221_v18  ;;  %v224_v23 = vld [vmem:[%s1065_s20 + $0xc0] sm:$0xff]  ;;  %v225_v25 = vld [vmem:[%s1065_s20 + $0xc8] sm:$0xff]  ;;  %v948_v27 = vcombine.low %v216_v14, %v220_v16  ;;  %v214_v9 = vld [vmem:[%s1065_s20 + $0x70] sm:$0xff] }
  0x17   : > { %v228_v24 = vld [vmem:[%s1065_s20 + $0xe0] sm:$0xff]  ;;  %v229_v26 = vld [vmem:[%s1065_s20 + $0xe8] sm:$0xff]  ;;  %v950_v28 = vcombine.low %v217_v17, %v221_v18  ;;  %v211_v10 = vld [vmem:[%s1065_s20 + $0x58] sm:$0xff]  ;;  %v938_v14 = vcombine.low %v203_v2, %v207_v3  ;;  %v945_v15 = vcombine.high %v210_v8, %v214_v9 }
  0x18   : > { %v957_v29 = vcombine.high %v224_v23, %v228_v24  ;;  %v959_v30 = vcombine.high %v225_v25, %v229_v26  ;;  %v232_v31 = vld [vmem:[%s1065_s20 + $0x100] sm:$0xff]  ;;  %v233_v33 = vld [vmem:[%s1065_s20 + $0x108] sm:$0xff]  ;;  %v956_v35 = vcombine.low %v224_v23, %v228_v24  ;;  %v958_v36 = vcombine.low %v225_v25, %v229_v26  ;;  %v215_v11 = vld [vmem:[%s1065_s20 + $0x78] sm:$0xff] }
  0x19   : > { %587 = vmatpush1.bf16.msra.mxu0 %v940_v19  ;;  %628 = vmatpush1.bf16.msra.mxu1 %v942_v20  ;;  %v236_v32 = vld [vmem:[%s1065_s20 + $0x120] sm:$0xff]  ;;  %v237_v34 = vld [vmem:[%s1065_s20 + $0x128] sm:$0xff]  ;;  %v947_v16 = vcombine.high %v211_v10, %v215_v11  ;;  %v218_v17 = vld [vmem:[%s1065_s20 + $0x90] sm:$0xff] }
  0x1a   : > { %588 = vmatprep.subr.bf16.mxu0 %v949_v21  ;;  %629 = vmatprep.subr.bf16.mxu1 %v951_v22  ;;  %v965_v37 = vcombine.high %v232_v31, %v236_v32  ;;  %v967_v38 = vcombine.high %v233_v33, %v237_v34  ;;  %v240_v39 = vld [vmem:[%s1065_s20 + $0x140] sm:$0xff]  ;;  %v241_v41 = vld [vmem:[%s1065_s20 + $0x148] sm:$0xff]  ;;  %v964_v43 = vcombine.low %v232_v31, %v236_v32  ;;  %v222_v18 = vld [vmem:[%s1065_s20 + $0xb0] sm:$0xff] }
  0x1b   : > { %v244_v40 = vld [vmem:[%s1065_s20 + $0x160] sm:$0xff]  ;;  %v245_v42 = vld [vmem:[%s1065_s20 + $0x168] sm:$0xff]  ;;  %v966_v44 = vcombine.low %v233_v33, %v237_v34  ;;  %v219_v19 = vld [vmem:[%s1065_s20 + $0x98] sm:$0xff]  ;;  %v944_v21 = vcombine.low %v210_v8, %v214_v9  ;;  %v946_v22 = vcombine.low %v211_v10, %v215_v11  ;;  %v953_v23 = vcombine.high %v218_v17, %v222_v18 }
  0x1c   : > { %v973_v45 = vcombine.high %v240_v39, %v244_v40  ;;  %v975_v46 = vcombine.high %v241_v41, %v245_v42  ;;  %v248_v47 = vld [vmem:[%s1065_s20 + $0x180] sm:$0xff]  ;;  %v249_v49 = vld [vmem:[%s1065_s20 + $0x188] sm:$0xff]  ;;  %v972_v51 = vcombine.low %v240_v39, %v244_v40  ;;  %v974_v52 = vcombine.low %v241_v41, %v245_v42  ;;  %v223_v20 = vld [vmem:[%s1065_s20 + $0xb8] sm:$0xff] }
  0x1d   : > { %589 = vmatpush1.bf16.msra.mxu0 %v948_v27  ;;  %630 = vmatpush1.bf16.msra.mxu1 %v950_v28  ;;  %v252_v48 = vld [vmem:[%s1065_s20 + $0x1a0] sm:$0xff]  ;;  %v253_v50 = vld [vmem:[%s1065_s20 + $0x1a8] sm:$0xff]  ;;  %v955_v24 = vcombine.high %v219_v19, %v223_v20  ;;  %v226_v25 = vld [vmem:[%s1065_s20 + $0xd0] sm:$0xff] }
  0x1e   : > { %590 = vmatprep.subr.bf16.mxu0 %v957_v29  ;;  %631 = vmatprep.subr.bf16.mxu1 %v959_v30  ;;  %v981_v53 = vcombine.high %v248_v47, %v252_v48  ;;  %v983_v54 = vcombine.high %v249_v49, %v253_v50  ;;  %v256_v55 = vld [vmem:[%s1065_s20 + $0x1c0] sm:$0xff]  ;;  %v257_v57 = vld [vmem:[%s1065_s20 + $0x1c8] sm:$0xff]  ;;  %v980_v59 = vcombine.low %v248_v47, %v252_v48  ;;  %v230_v26 = vld [vmem:[%s1065_s20 + $0xf0] sm:$0xff] }
  0x1f   : > { %v260_v56 = vld [vmem:[%s1065_s20 + $0x1e0] sm:$0xff]  ;;  %v261_v58 = vld [vmem:[%s1065_s20 + $0x1e8] sm:$0xff]  ;;  %v982_v60 = vcombine.low %v249_v49, %v253_v50  ;;  %v227_v27 = vld [vmem:[%s1065_s20 + $0xd8] sm:$0xff]  ;;  %v952_v29 = vcombine.low %v218_v17, %v222_v18  ;;  %v954_v30 = vcombine.low %v219_v19, %v223_v20  ;;  %v961_v31 = vcombine.high %v226_v25, %v230_v26 }
  0x20   : > { %v989_v61 = vcombine.high %v256_v55, %v260_v56  ;;  %v991_v62 = vcombine.high %v257_v57, %v261_v58  ;;  %v988_v4 = vcombine.low %v256_v55, %v260_v56  ;;  %v990_v5 = vcombine.low %v257_v57, %v261_v58  ;;  %v1110_v12 = vld [vmem:[%s1171_s0] sm:$0x3]  ;;  %v231_v28 = vld [vmem:[%s1065_s20 + $0xf8] sm:$0xff]  ;;  %v234_v33 = vld [vmem:[%s1065_s20 + $0x110] sm:$0xff] }
  0x21   : > { %591 = vmatpush1.bf16.msra.mxu0 %v956_v35  ;;  %632 = vmatpush1.bf16.msra.mxu1 %v958_v36  ;;  %v963_v32 = vcombine.high %v227_v27, %v231_v28  ;;  %v238_v34 = vld [vmem:[%s1065_s20 + $0x130] sm:$0xff]  ;;  %v235_v35 = vld [vmem:[%s1065_s20 + $0x118] sm:$0xff] }
  0x22   : > { %592 = vmatprep.subr.bf16.mxu0 %v965_v37  ;;  %633 = vmatprep.subr.bf16.mxu1 %v967_v38  ;;  %v239_v36 = vld [vmem:[%s1065_s20 + $0x138] sm:$0xff]  ;;  %v960_v37 = vcombine.low %v226_v25, %v230_v26  ;;  %v969_v38 = vcombine.high %v234_v33, %v238_v34  ;;  %v242_v40 = vld [vmem:[%s1065_s20 + $0x150] sm:$0xff] }
  0x23   : > { %v971_v39 = vcombine.high %v235_v35, %v239_v36  ;;  %v246_v41 = vld [vmem:[%s1065_s20 + $0x170] sm:$0xff]  ;;  %v243_v42 = vld [vmem:[%s1065_s20 + $0x158] sm:$0xff] }
  0x24   : > { %v250_v48 = vld [vmem:[%s1065_s20 + $0x190] sm:$0xff]  ;;  %v251_v50 = vld [vmem:[%s1065_s20 + $0x198] sm:$0xff] }
  0x25   : > { %593 = vmatpush1.bf16.msra.mxu0 %v964_v43  ;;  %634 = vmatpush1.bf16.msra.mxu1 %v966_v44  ;;  %v247_v43 = vld [vmem:[%s1065_s20 + $0x178] sm:$0xff]  ;;  %v968_v44 = vcombine.low %v234_v33, %v238_v34  ;;  %v254_v49 = vld [vmem:[%s1065_s20 + $0x1b0] sm:$0xff]  ;;  %v812_v34 = vld [vmem:[%s1173_s2] sm:$0xf] }
  0x26   : > { %594 = vmatprep.subr.bf16.mxu0 %v973_v45  ;;  %635 = vmatprep.subr.bf16.mxu1 %v975_v46  ;;  %v970_v45 = vcombine.low %v235_v35, %v239_v36  ;;  %v977_v46 = vcombine.high %v242_v40, %v246_v41  ;;  %v979_v47 = vcombine.high %v243_v42, %v247_v43  ;;  %v258_v56 = vld [vmem:[%s1065_s20 + $0x1d0] sm:$0xff]  ;;  %v259_v58 = vld [vmem:[%s1065_s20 + $0x1d8] sm:$0xff]  ;;  %v826_v35 = vld [vmem:[%s1174_s3] sm:$0xf] }
  0x27   : > { %v262_v57 = vld [vmem:[%s1065_s20 + $0x1f0] sm:$0xff]  ;;  %815 = vperm.xlu1 %1009, %v812_v34  }
  0x28   : > { %v992_v1 = vcombine.low %v258_v56, %v262_v57 }
  0x29   : > { %595 = vmatpush1.bf16.msra.mxu0 %v972_v51  ;;  %636 = vmatpush1.bf16.msra.mxu1 %v974_v52  ;;  %v255_v51 = vld [vmem:[%s1065_s20 + $0x1b8] sm:$0xff]  ;;  %v976_v52 = vcombine.low %v242_v40, %v246_v41 }
  0x2a   : > { %596 = vmatprep.subr.bf16.mxu0 %v981_v53  ;;  %637 = vmatprep.subr.bf16.mxu1 %v983_v54  ;;  %v978_v53 = vcombine.low %v243_v42, %v247_v43  ;;  %v985_v54 = vcombine.high %v250_v48, %v254_v49  ;;  %v987_v55 = vcombine.high %v251_v50, %v255_v51 }
  0x2b   : > { %829 = vperm.xlu1 %1009, %v826_v35  }
  0x2d   : > { %597 = vmatpush1.bf16.msra.mxu0 %v980_v59  ;;  %638 = vmatpush1.bf16.msra.mxu1 %v982_v60  ;;  %v263_v59 = vld [vmem:[%s1065_s20 + $0x1f8] sm:$0xff]  ;;  %v984_v60 = vcombine.low %v250_v48, %v254_v49 }
  0x2e   : > { %598 = vmatprep.subr.bf16.mxu0 %v989_v61  ;;  %639 = vmatprep.subr.bf16.mxu1 %v991_v62  ;;  %v986_v61 = vcombine.low %v251_v50, %v255_v51  ;;  %v993_v62 = vcombine.high %v258_v56, %v262_v57  ;;  %v995_v63 = vcombine.high %v259_v58, %v263_v59 }
  0x2f   : > { %v994_v2 = vcombine.low %v259_v58, %v263_v59 }
  0x31   : > { %599 = vmatpush1.bf16.msra.mxu0 %v988_v4  ;;  %640 = vmatpush1.bf16.msra.mxu1 %v990_v5 }
  0x32   : > { %666 = vmatprep.subr.bf16.mxu0 %v937_v6  ;;  %707 = vmatprep.subr.bf16.mxu1 %v939_v7 }
  0x34   : > { %617 = vmatmul.mubr.bf16.vlgmr.msra.gmra.mrb[0].mxu0 %v1110_v12  ;;  %658 = vmatmul.mubr.bf16.vlgmr.msra.gmra.mrb[0].mxu1 %v1110_v12 }
  0x35   : > { %667 = vmatpush1.bf16.msra.mxu0 %v936_v13  ;;  %708 = vmatpush1.bf16.msra.mxu1 %v938_v14 }
  0x36   : > { %668 = vmatprep.subr.bf16.mxu0 %v945_v15  ;;  %709 = vmatprep.subr.bf16.mxu1 %v947_v16 }
  0x37   : > { %698 = vmatprep.mubr.bf16.mxu0 %v1021_v0  ;;  %739 = vmatprep.mubr.bf16.mxu1 %v1021_v0  ;;  %v962_v0 = vcombine.low %v227_v27, %v231_v28 }
  0x39   : > { %669 = vmatpush1.bf16.msra.mxu0 %v944_v21  ;;  %710 = vmatpush1.bf16.msra.mxu1 %v946_v22 }
  0x3a   : > { %670 = vmatprep.subr.bf16.mxu0 %v953_v23  ;;  %711 = vmatprep.subr.bf16.mxu1 %v955_v24 }
  0x3d   : > { %671 = vmatpush1.bf16.msra.mxu0 %v952_v29  ;;  %712 = vmatpush1.bf16.msra.mxu1 %v954_v30 }
  0x3e   : > { %672 = vmatprep.subr.bf16.mxu0 %v961_v31  ;;  %713 = vmatprep.subr.bf16.mxu1 %v963_v32 }
  0x41   : > { %673 = vmatpush1.bf16.msra.mxu0 %v960_v37  ;;  %714 = vmatpush1.bf16.msra.mxu1 %v962_v0 }
  0x42   : > { %674 = vmatprep.subr.bf16.mxu0 %v969_v38  ;;  %715 = vmatprep.subr.bf16.mxu1 %v971_v39 }
  0x45   : > { %675 = vmatpush1.bf16.msra.mxu0 %v968_v44  ;;  %716 = vmatpush1.bf16.msra.mxu1 %v970_v45 }
  0x46   : > { %676 = vmatprep.subr.bf16.mxu0 %v977_v46  ;;  %717 = vmatprep.subr.bf16.mxu1 %v979_v47 }
  0x49   : > { %677 = vmatpush1.bf16.msra.mxu0 %v976_v52  ;;  %718 = vmatpush1.bf16.msra.mxu1 %v978_v53 }
  0x4a   : > { %678 = vmatprep.subr.bf16.mxu0 %v985_v54  ;;  %719 = vmatprep.subr.bf16.mxu1 %v987_v55 }
  0x4d   : > { %679 = vmatpush1.bf16.msra.mxu0 %v984_v60  ;;  %720 = vmatpush1.bf16.msra.mxu1 %v986_v61 }
  0x4e   : > { %680 = vmatprep.subr.bf16.mxu0 %v993_v62  ;;  %721 = vmatprep.subr.bf16.mxu1 %v995_v63 }
  0x51   : > { %681 = vmatpush1.bf16.msra.mxu0 %v992_v1  ;;  %722 = vmatpush1.bf16.msra.mxu1 %v994_v2 }
  0x54   : > { %699 = vmatmul.mubr.bf16.vlgmr.msra.gmra.mrb[4].mxu0 %v1110_v12  ;;  %740 = vmatmul.mubr.bf16.vlgmr.msra.gmra.mrb[4].mxu1 %v1110_v12 }
 0x107   : > { %v618_v3 = vpop.f32.mrb[0].mxu0  ;;  %v659_v6 = vpop.f32.mrb[0].mxu1 }
 0x108   : > { %v749_v4 = vsel %vm748_vm0, %v618_v3, 0.0  ;;  %v620_v5 = vpop.f32.mrb[1].mxu0  ;;  %v752_v9 = vsel %vm748_vm0, %v659_v6, 0.0  ;;  %v661_v10 = vpop.f32.mrb[1].mxu1 }
 0x109   : > { %v750_v7 = vsel %vm748_vm0, %v620_v5, 0.0  ;;  %v622_v8 = vpop.f32.mrb[2].mxu0  ;;  %v663_v14 = vpop.f32.mrb[2].mxu1  ;;  %v754_v15 = vsel %vm748_vm0, %v661_v10, 0.0 }
 0x10a   : > { %v751_v11 = vadd.f32 %v750_v7, %v749_v4  ;;  %v623_v13 = vpop.f32.mrb[3].mxu0  ;;  %v664_v16 = vpop.f32.mrb[3].mxu1 }
 0x10b   : > { %v816_v8 = vpop.permute.xlu1 %815 }
 0x10c   : > { %v753_v17 = vadd.f32 %v752_v9, %v751_v11 }
 0x10e   : > { %v755_v12 = vadd.f32 %v754_v15, %v753_v17 }
 0x127   : > { %v700_v18 = vpop.f32.mrb[4].mxu0  ;;  %v741_v21 = vpop.f32.mrb[4].mxu1 }
 0x128   : > { %v756_v19 = vsel %vm748_vm0, %v700_v18, 0.0  ;;  %v702_v20 = vpop.f32.mrb[5].mxu0  ;;  %v743_v25 = vpop.f32.mrb[5].mxu1  ;;  %v760_v26 = vsel %vm748_vm0, %v741_v21, 0.0 }
 0x129   : > { %v757_v22 = vadd.f32 %v756_v19, %v755_v12  ;;  %v758_v23 = vsel %vm748_vm0, %v702_v20, 0.0  ;;  %v704_v24 = vpop.f32.mrb[6].mxu0  ;;  %v745_v28 = vpop.f32.mrb[6].mxu1  ;;  %v762_v32 = vsel %vm748_vm0, %v743_v25, 0.0 }
 0x12a   : > { %v705_v27 = vpop.f32.mrb[7].mxu0  ;;  %v746_v30 = vpop.f32.mrb[7].mxu1 }
 0x12b   : > { %v759_v29 = vadd.f32 %v758_v23, %v757_v22  ;;  %v830_v22 = vpop.permute.xlu1 %829 }
 0x12d   : > { %v761_v31 = vadd.f32 %v760_v26, %v759_v29 }
 0x12f   : > { %v763_v33 = vadd.f32 %v762_v32, %v761_v31 }
 0x131   : > { %764 = vadd.xlane.f32.xlu0 %v763_v33 }
 0x1be   : > { %v765_v36 = vpop.xlane.xlu0 %764 }
 0x1bf   : > { %v767_v37 = vmul.f32 0.0009765625, %v765_v36 }
 0x1c1   : > { %v768_v0 = vsub.f32 %v618_v3, %v767_v37  ;;  %v769_v38 = vsub.f32 %v620_v5, %v767_v37  ;;  %v770_v39 = vsub.f32 %v659_v6, %v767_v37  ;;  %v771_v40 = vsub.f32 %v661_v10, %v767_v37 }
 0x1c2   : > { %v772_v41 = vsub.f32 %v700_v18, %v767_v37  ;;  %v773_v45 = vsub.f32 %v702_v20, %v767_v37  ;;  %v774_v50 = vsub.f32 %v741_v21, %v767_v37  ;;  %v775_v54 = vsub.f32 %v743_v25, %v767_v37 }
 0x1c3   : > { %v776_v42 = vmul.f32 %v768_v0, %v768_v0  ;;  %v777_v43 = vmul.f32 %v769_v38, %v769_v38  ;;  %v778_v44 = vmul.f32 %v770_v39, %v770_v39  ;;  %v779_v46 = vmul.f32 %v771_v40, %v771_v40 }
 0x1c4   : > { %v780_v51 = vmul.f32 %v772_v41, %v772_v41  ;;  %v781_v55 = vmul.f32 %v773_v45, %v773_v45  ;;  %v782_v58 = vmul.f32 %v774_v50, %v774_v50  ;;  %v783_v61 = vmul.f32 %v775_v54, %v775_v54 }
 0x1c5   : > { %v784_v47 = vsel %vm748_vm0, %v776_v42, 0.0  ;;  %v785_v48 = vsel %vm748_vm0, %v777_v43, 0.0  ;;  %v787_v52 = vsel %vm748_vm0, %v778_v44, 0.0  ;;  %v789_v56 = vsel %vm748_vm0, %v779_v46, 0.0 }
 0x1c6   : > { %v786_v49 = vadd.f32 %v785_v48, %v784_v47  ;;  %v791_v59 = vsel %vm748_vm0, %v780_v51, 0.0  ;;  %v793_v62 = vsel %vm748_vm0, %v781_v55, 0.0  ;;  %v795_v1 = vsel %vm748_vm0, %v782_v58, 0.0 }
 0x1c7   : > { %v797_v3 = vsel %vm748_vm0, %v783_v61, 0.0 }
 0x1c8   : > { %v788_v53 = vadd.f32 %v787_v52, %v786_v49 }
 0x1ca   : > { %v790_v57 = vadd.f32 %v789_v56, %v788_v53 }
 0x1cc   : > { %v792_v60 = vadd.f32 %v791_v59, %v790_v57 }
 0x1ce   : > { %v794_v63 = vadd.f32 %v793_v62, %v792_v60 }
 0x1d0   : > { %v796_v2 = vadd.f32 %v795_v1, %v794_v63 }
 0x1d2   : > { %v798_v4 = vadd.f32 %v797_v3, %v796_v2 }
 0x1d4   : > { %799 = vadd.xlane.f32.xlu0 %v798_v4 }
 0x261   : > { %v800_v5 = vpop.xlane.xlu0 %799 }
 0x262   : > { %v801_v6 = vmul.f32 0.0009765625, %v800_v5 }
 0x264   : > { %v802_v7 = vadd.f32 1e-05, %v801_v6 }
 0x266   : > { %1011 = vrsqrt.f32 %v802_v7 }
 0x270   : > { %v1012_v9 = vpop.eup %1011 }
 0x271   : > { %v804_v10 = vmul.f32 %v1012_v9, %v768_v0  ;;  %v805_v11 = vmul.f32 %v1012_v9, %v769_v38  ;;  %v806_v13 = vmul.f32 %v1012_v9, %v770_v39  ;;  %v807_v14 = vmul.f32 %v1012_v9, %v771_v40 }
 0x272   : > { %v808_v15 = vmul.f32 %v1012_v9, %v772_v41  ;;  %v809_v16 = vmul.f32 %v1012_v9, %v773_v45  ;;  %v810_v17 = vmul.f32 %v1012_v9, %v774_v50  ;;  %v811_v12 = vmul.f32 %v1012_v9, %v775_v54 }
 0x273   : > { %v818_v18 = vmul.f32 %v816_v8, %v804_v10  ;;  %v819_v19 = vmul.f32 %v816_v8, %v805_v11  ;;  %v820_v20 = vmul.f32 %v816_v8, %v806_v13  ;;  %v821_v21 = vmul.f32 %v816_v8, %v807_v14 }
 0x274   : > { %v822_v23 = vmul.f32 %v816_v8, %v808_v15  ;;  %v823_v24 = vmul.f32 %v816_v8, %v809_v16  ;;  %v824_v25 = vmul.f32 %v816_v8, %v810_v17  ;;  %v825_v26 = vmul.f32 %v816_v8, %v811_v12 }
 0x275   : > { %v832_v27 = vadd.f32 %v830_v22, %v818_v18  ;;  %v833_v28 = vadd.f32 %v830_v22, %v819_v19  ;;  %v834_v29 = vadd.f32 %v830_v22, %v820_v20  ;;  %v835_v30 = vadd.f32 %v830_v22, %v821_v21 }
 0x276   : > { %v836_v31 = vadd.f32 %v830_v22, %v822_v23  ;;  %v837_v32 = vadd.f32 %v830_v22, %v823_v24  ;;  %v838_v33 = vadd.f32 %v830_v22, %v824_v25  ;;  %v839_v34 = vadd.f32 %v830_v22, %v825_v26 }
 0x277   : > { %v840_v35 = vmax.f32 %v832_v27, 0.0  ;;  %v841_v36 = vmax.f32 %v833_v28, 0.0  ;;  %v842_v37 = vmax.f32 %v834_v29, 0.0  ;;  %v843_v0 = vmax.f32 %v835_v30, 0.0 }
 0x278   : > { %v844_v38 = vmax.f32 %v836_v31, 0.0  ;;  %v845_v39 = vmax.f32 %v837_v32, 0.0  ;;  %v846_v40 = vmax.f32 %v838_v33, 0.0  ;;  %v847_v41 = vmax.f32 %v839_v34, 0.0 }
 0x279   : > { %v856_v42 = vcombine.low %v840_v35, %v841_v36  ;;  %v857_v43 = vcombine.low %v842_v37, %v843_v0 }
 0x27a   : > { %v858_v44 = vcombine.low %v844_v38, %v845_v39  ;;  %v859_v45 = vcombine.low %v846_v40, %v847_v41 }
 0x27b   : > { %864 = vst [vmem:[%s197_s30] sm:$0xff] %v856_v42  ;;  %865 = vst [vmem:[%s197_s30 + $0x8] sm:$0xff] %v857_v43 }
 0x27c   : > { %866 = vst [vmem:[%s197_s30 + $0x10] sm:$0xff] %v858_v44  ;;  %867 = vst [vmem:[%s197_s30 + $0x18] sm:$0xff] %v859_v45 }
 0x27d PF: > { %s14_s15 = sadd.s32 1, %s1019_s15  }
 0x27e   : > { %p11_p4 = scmp.ge.s32.totalorder %s14_s15, 4  }
 0x280   :  { %13 = sbr.rel (!%p11_p4) target bundleno = 1 (0x1), region = 66 }

// kernel: image_generator_r_forward.5
= control target key start
LH: loop header
LB: loop body
LE: loop exit
PB: predicated region body
PF: predicated region fallthrough
CT: control target
= control target key end

     0   :  { %s1360_s9 = smov 0   ;;  %s1528_s0 = inlined_call_operand.vmem [shape: bf16[3,256], index: 0, kind: input, shape index: {}]   ;;  %s1529_s1 = inlined_call_operand.vmem [shape: bf16[2,256,1024], index: 1, kind: input, shape index: {}]   ;;  %s1530_s2 = inlined_call_operand.vmem [shape: f32[2,3,1024], index: 2, kind: output, shape index: {}]  }
   0x1 LB: > { %s1171_s10 = sadd.s32 4294967295, %s1343_s9   ;;  %p1175_p0 = scmp.ge.s32.totalorder %s1343_s9, 1  ;;  %s1343_s9 = sphi %s1360_s9, %s12_s9  }
   0x2   : > { %p112_p1 = scmp.lt.s32.totalorder %s1343_s9, 3 }
   0x4   : > { %p113_p2 = pnand %p1175_p0, %p112_p1 }
   0x5   : > { %p134_p3 = scmp.lt.s32.totalorder (!%p113_p2), %s1171_s10, 1  ;;  %v1371_v0 = vld.sshfl [vmem:[%s1528_s0] sm:$0x33 pattern:$0x76325410] (!%p113_p2) }
   0x6   : > { %116 = sbr.rel (%p113_p2) target bundleno = 377 (0x179), region = 28  ;;  %v1375_v1 = vcombine.high (!%p113_p2), %v1371_v0, %v1371_v0 }
   0x8   : > { %956 = vmatprep.mubr.bf16.mxu0 (!%p113_p2), %v1375_v1  ;;  %997 = vmatprep.mubr.bf16.mxu1 (!%p113_p2), %v1375_v1 }
   0xd   : > { %s1532_s10 = smov (!%p134_p3, %s1171_s10), 1 }
   0xe   : > { %s1311_s13 = sshll.u32 %s1532_s10, 10  ;;  %s1312_s17 = sshll.u32 %s1532_s10, 5 }
   0xf   : > { %s1385_s16 = scalar_lea.vmem %s1529_s1, %s1311_s13  ;;  %s143_s20 = scalar_lea.vmem %s1530_s2, %s1312_s17 }
  0x10   : > { %v145_v2 = vld [vmem:[%s1385_s16] sm:$0xff]  ;;  %v146_v4 = vld [vmem:[%s1385_s16 + $0x8] sm:$0xff] }
  0x11   : > { %v149_v3 = vld [vmem:[%s1385_s16 + $0x20] sm:$0xff]  ;;  %v150_v6 = vld [vmem:[%s1385_s16 + $0x28] sm:$0xff] }
  0x12   : > { %v1182_v5 = vcombine.high %v145_v2, %v149_v3  ;;  %v1181_v7 = vcombine.low %v145_v2, %v149_v3  ;;  %v153_v8 = vld [vmem:[%s1385_s16 + $0x40] sm:$0xff]  ;;  %v1184_v10 = vcombine.high %v146_v4, %v150_v6  ;;  %v1183_v11 = vcombine.low %v146_v4, %v150_v6  ;;  %v154_v13 = vld [vmem:[%s1385_s16 + $0x48] sm:$0xff] }
  0x13   : > { %v157_v9 = vld [vmem:[%s1385_s16 + $0x60] sm:$0xff]  ;;  %v158_v14 = vld [vmem:[%s1385_s16 + $0x68] sm:$0xff] }
  0x14   : > { %v1190_v12 = vcombine.high %v153_v8, %v157_v9  ;;  %v161_v15 = vld [vmem:[%s1385_s16 + $0x80] sm:$0xff]  ;;  %924 = vmatprep.subr.bf16.mxu0 %v1182_v5  ;;  %v1192_v16 = vcombine.high %v154_v13, %v158_v14  ;;  %v162_v18 = vld [vmem:[%s1385_s16 + $0x88] sm:$0xff]  ;;  %965 = vmatprep.subr.bf16.mxu1 %v1184_v10  ;;  %v1189_v20 = vcombine.low %v153_v8, %v157_v9 }
  0x15   : > { %v165_v17 = vld [vmem:[%s1385_s16 + $0xa0] sm:$0xff]  ;;  %v166_v19 = vld [vmem:[%s1385_s16 + $0xa8] sm:$0xff]  ;;  %925 = vmatpush1.bf16.msra.mxu0 %v1181_v7  ;;  %966 = vmatpush1.bf16.msra.mxu1 %v1183_v11  ;;  %v1191_v21 = vcombine.low %v154_v13, %v158_v14 }
  0x16   : > { %926 = vmatprep.subr.bf16.mxu0 %v1190_v12  ;;  %v1198_v22 = vcombine.high %v161_v15, %v165_v17  ;;  %967 = vmatprep.subr.bf16.mxu1 %v1192_v16  ;;  %v1200_v23 = vcombine.high %v162_v18, %v166_v19  ;;  %v169_v24 = vld [vmem:[%s1385_s16 + $0xc0] sm:$0xff]  ;;  %v170_v26 = vld [vmem:[%s1385_s16 + $0xc8] sm:$0xff]  ;;  %v1197_v28 = vcombine.low %v161_v15, %v165_v17 }
  0x17   : > { %v173_v25 = vld [vmem:[%s1385_s16 + $0xe0] sm:$0xff]  ;;  %v174_v27 = vld [vmem:[%s1385_s16 + $0xe8] sm:$0xff]  ;;  %v1199_v29 = vcombine.low %v162_v18, %v166_v19 }
  0x18   : > { %v1206_v30 = vcombine.high %v169_v24, %v173_v25  ;;  %v1208_v31 = vcombine.high %v170_v26, %v174_v27  ;;  %v177_v32 = vld [vmem:[%s1385_s16 + $0x100] sm:$0xff]  ;;  %v178_v34 = vld [vmem:[%s1385_s16 + $0x108] sm:$0xff]  ;;  %v1205_v36 = vcombine.low %v169_v24, %v173_v25  ;;  %v1207_v37 = vcombine.low %v170_v26, %v174_v27 }
  0x19   : > { %927 = vmatpush1.bf16.msra.mxu0 %v1189_v20  ;;  %968 = vmatpush1.bf16.msra.mxu1 %v1191_v21  ;;  %v181_v33 = vld [vmem:[%s1385_s16 + $0x120] sm:$0xff]  ;;  %v182_v35 = vld [vmem:[%s1385_s16 + $0x128] sm:$0xff] }
  0x1a   : > { %928 = vmatprep.subr.bf16.mxu0 %v1198_v22  ;;  %969 = vmatprep.subr.bf16.mxu1 %v1200_v23  ;;  %v1214_v38 = vcombine.high %v177_v32, %v181_v33  ;;  %v1216_v39 = vcombine.high %v178_v34, %v182_v35  ;;  %v185_v40 = vld [vmem:[%s1385_s16 + $0x140] sm:$0xff]  ;;  %v186_v42 = vld [vmem:[%s1385_s16 + $0x148] sm:$0xff]  ;;  %v1213_v44 = vcombine.low %v177_v32, %v181_v33 }
  0x1b   : > { %v189_v41 = vld [vmem:[%s1385_s16 + $0x160] sm:$0xff]  ;;  %v190_v43 = vld [vmem:[%s1385_s16 + $0x168] sm:$0xff]  ;;  %v1215_v45 = vcombine.low %v178_v34, %v182_v35 }
  0x1c   : > { %v1222_v46 = vcombine.high %v185_v40, %v189_v41  ;;  %v1224_v47 = vcombine.high %v186_v42, %v190_v43  ;;  %v193_v48 = vld [vmem:[%s1385_s16 + $0x180] sm:$0xff]  ;;  %v194_v50 = vld [vmem:[%s1385_s16 + $0x188] sm:$0xff]  ;;  %v1221_v52 = vcombine.low %v185_v40, %v189_v41  ;;  %v1223_v53 = vcombine.low %v186_v42, %v190_v43 }
  0x1d   : > { %929 = vmatpush1.bf16.msra.mxu0 %v1197_v28  ;;  %970 = vmatpush1.bf16.msra.mxu1 %v1199_v29  ;;  %v197_v49 = vld [vmem:[%s1385_s16 + $0x1a0] sm:$0xff]  ;;  %v198_v51 = vld [vmem:[%s1385_s16 + $0x1a8] sm:$0xff] }
  0x1e   : > { %930 = vmatprep.subr.bf16.mxu0 %v1206_v30  ;;  %971 = vmatprep.subr.bf16.mxu1 %v1208_v31  ;;  %v1230_v54 = vcombine.high %v193_v48, %v197_v49  ;;  %v1232_v55 = vcombine.high %v194_v50, %v198_v51  ;;  %v201_v56 = vld [vmem:[%s1385_s16 + $0x1c0] sm:$0xff]  ;;  %v202_v58 = vld [vmem:[%s1385_s16 + $0x1c8] sm:$0xff]  ;;  %v1229_v60 = vcombine.low %v193_v48, %v197_v49 }
  0x1f   : > { %v205_v57 = vld [vmem:[%s1385_s16 + $0x1e0] sm:$0xff]  ;;  %v206_v59 = vld [vmem:[%s1385_s16 + $0x1e8] sm:$0xff]  ;;  %v1231_v61 = vcombine.low %v194_v50, %v198_v51 }
  0x20   : > { %v1238_v62 = vcombine.high %v201_v56, %v205_v57  ;;  %v1240_v63 = vcombine.high %v202_v58, %v206_v59  ;;  %v209_v2 = vld [vmem:[%s1385_s16 + $0x200] sm:$0xff]  ;;  %v210_v4 = vld [vmem:[%s1385_s16 + $0x208] sm:$0xff]  ;;  %v1237_v6 = vcombine.low %v201_v56, %v205_v57  ;;  %v1239_v7 = vcombine.low %v202_v58, %v206_v59 }
  0x21   : > { %931 = vmatpush1.bf16.msra.mxu0 %v1205_v36  ;;  %972 = vmatpush1.bf16.msra.mxu1 %v1207_v37  ;;  %v213_v3 = vld [vmem:[%s1385_s16 + $0x220] sm:$0xff]  ;;  %v214_v5 = vld [vmem:[%s1385_s16 + $0x228] sm:$0xff] }
  0x22   : > { %932 = vmatprep.subr.bf16.mxu0 %v1214_v38  ;;  %973 = vmatprep.subr.bf16.mxu1 %v1216_v39  ;;  %v1246_v8 = vcombine.high %v209_v2, %v213_v3  ;;  %v1248_v9 = vcombine.high %v210_v4, %v214_v5  ;;  %v217_v10 = vld [vmem:[%s1385_s16 + $0x240] sm:$0xff]  ;;  %v218_v12 = vld [vmem:[%s1385_s16 + $0x248] sm:$0xff]  ;;  %v1245_v14 = vcombine.low %v209_v2, %v213_v3 }
  0x23   : > { %v221_v11 = vld [vmem:[%s1385_s16 + $0x260] sm:$0xff]  ;;  %v222_v13 = vld [vmem:[%s1385_s16 + $0x268] sm:$0xff]  ;;  %v1247_v15 = vcombine.low %v210_v4, %v214_v5  ;;  %v147_v4 = vld [vmem:[%s1385_s16 + $0x10] sm:$0xff] }
  0x24   : > { %v1254_v16 = vcombine.high %v217_v10, %v221_v11  ;;  %v1256_v17 = vcombine.high %v218_v12, %v222_v13  ;;  %v225_v18 = vld [vmem:[%s1385_s16 + $0x280] sm:$0xff]  ;;  %v226_v20 = vld [vmem:[%s1385_s16 + $0x288] sm:$0xff]  ;;  %v1253_v22 = vcombine.low %v217_v10, %v221_v11  ;;  %v1255_v23 = vcombine.low %v218_v12, %v222_v13  ;;  %v151_v5 = vld [vmem:[%s1385_s16 + $0x30] sm:$0xff] }
  0x25   : > { %933 = vmatpush1.bf16.msra.mxu0 %v1213_v44  ;;  %974 = vmatpush1.bf16.msra.mxu1 %v1215_v45  ;;  %v229_v19 = vld [vmem:[%s1385_s16 + $0x2a0] sm:$0xff]  ;;  %v230_v21 = vld [vmem:[%s1385_s16 + $0x2a8] sm:$0xff]  ;;  %v1186_v10 = vcombine.high %v147_v4, %v151_v5  ;;  %v155_v12 = vld [vmem:[%s1385_s16 + $0x50] sm:$0xff] }
  0x26   : > { %934 = vmatprep.subr.bf16.mxu0 %v1222_v46  ;;  %975 = vmatprep.subr.bf16.mxu1 %v1224_v47  ;;  %v1262_v24 = vcombine.high %v225_v18, %v229_v19  ;;  %v1264_v25 = vcombine.high %v226_v20, %v230_v21  ;;  %v233_v26 = vld [vmem:[%s1385_s16 + $0x2c0] sm:$0xff]  ;;  %v234_v28 = vld [vmem:[%s1385_s16 + $0x2c8] sm:$0xff]  ;;  %v1261_v30 = vcombine.low %v225_v18, %v229_v19  ;;  %v159_v13 = vld [vmem:[%s1385_s16 + $0x70] sm:$0xff] }
  0x27   : > { %v237_v27 = vld [vmem:[%s1385_s16 + $0x2e0] sm:$0xff]  ;;  %v238_v29 = vld [vmem:[%s1385_s16 + $0x2e8] sm:$0xff]  ;;  %v1263_v31 = vcombine.low %v226_v20, %v230_v21  ;;  %v1194_v18 = vcombine.high %v155_v12, %v159_v13  ;;  %v163_v20 = vld [vmem:[%s1385_s16 + $0x90] sm:$0xff] }
  0x28   : > { %v1270_v32 = vcombine.high %v233_v26, %v237_v27  ;;  %v1272_v33 = vcombine.high %v234_v28, %v238_v29  ;;  %v241_v34 = vld [vmem:[%s1385_s16 + $0x300] sm:$0xff]  ;;  %v242_v36 = vld [vmem:[%s1385_s16 + $0x308] sm:$0xff]  ;;  %v1269_v38 = vcombine.low %v233_v26, %v237_v27  ;;  %v1271_v39 = vcombine.low %v234_v28, %v238_v29  ;;  %v167_v21 = vld [vmem:[%s1385_s16 + $0xb0] sm:$0xff] }
  0x29   : > { %935 = vmatpush1.bf16.msra.mxu0 %v1221_v52  ;;  %976 = vmatpush1.bf16.msra.mxu1 %v1223_v53  ;;  %v245_v35 = vld [vmem:[%s1385_s16 + $0x320] sm:$0xff]  ;;  %v246_v37 = vld [vmem:[%s1385_s16 + $0x328] sm:$0xff]  ;;  %v1202_v26 = vcombine.high %v163_v20, %v167_v21  ;;  %v171_v28 = vld [vmem:[%s1385_s16 + $0xd0] sm:$0xff] }
  0x2a   : > { %936 = vmatprep.subr.bf16.mxu0 %v1230_v54  ;;  %977 = vmatprep.subr.bf16.mxu1 %v1232_v55  ;;  %v1278_v40 = vcombine.high %v241_v34, %v245_v35  ;;  %v1280_v41 = vcombine.high %v242_v36, %v246_v37  ;;  %v249_v42 = vld [vmem:[%s1385_s16 + $0x340] sm:$0xff]  ;;  %v250_v44 = vld [vmem:[%s1385_s16 + $0x348] sm:$0xff]  ;;  %v1277_v46 = vcombine.low %v241_v34, %v245_v35  ;;  %v175_v29 = vld [vmem:[%s1385_s16 + $0xf0] sm:$0xff] }
  0x2b   : > { %v253_v43 = vld [vmem:[%s1385_s16 + $0x360] sm:$0xff]  ;;  %v254_v45 = vld [vmem:[%s1385_s16 + $0x368] sm:$0xff]  ;;  %v1279_v47 = vcombine.low %v242_v36, %v246_v37  ;;  %v1210_v34 = vcombine.high %v171_v28, %v175_v29  ;;  %v179_v36 = vld [vmem:[%s1385_s16 + $0x110] sm:$0xff] }
  0x2c   : > { %v1286_v48 = vcombine.high %v249_v42, %v253_v43  ;;  %v1288_v49 = vcombine.high %v250_v44, %v254_v45  ;;  %v257_v50 = vld [vmem:[%s1385_s16 + $0x380] sm:$0xff]  ;;  %v258_v52 = vld [vmem:[%s1385_s16 + $0x388] sm:$0xff]  ;;  %v1285_v54 = vcombine.low %v249_v42, %v253_v43  ;;  %v1287_v55 = vcombine.low %v250_v44, %v254_v45  ;;  %v183_v37 = vld [vmem:[%s1385_s16 + $0x130] sm:$0xff] }
  0x2d   : > { %937 = vmatpush1.bf16.msra.mxu0 %v1229_v60  ;;  %978 = vmatpush1.bf16.msra.mxu1 %v1231_v61  ;;  %v261_v51 = vld [vmem:[%s1385_s16 + $0x3a0] sm:$0xff]  ;;  %v262_v53 = vld [vmem:[%s1385_s16 + $0x3a8] sm:$0xff]  ;;  %v187_v43 = vld [vmem:[%s1385_s16 + $0x150] sm:$0xff] }
  0x2e   : > { %938 = vmatprep.subr.bf16.mxu0 %v1238_v62  ;;  %979 = vmatprep.subr.bf16.mxu1 %v1240_v63  ;;  %v1294_v56 = vcombine.high %v257_v50, %v261_v51  ;;  %v1296_v57 = vcombine.high %v258_v52, %v262_v53  ;;  %v265_v58 = vld [vmem:[%s1385_s16 + $0x3c0] sm:$0xff]  ;;  %v266_v60 = vld [vmem:[%s1385_s16 + $0x3c8] sm:$0xff]  ;;  %v1293_v62 = vcombine.low %v257_v50, %v261_v51  ;;  %v191_v44 = vld [vmem:[%s1385_s16 + $0x170] sm:$0xff] }
  0x2f   : > { %v269_v59 = vld [vmem:[%s1385_s16 + $0x3e0] sm:$0xff]  ;;  %v270_v61 = vld [vmem:[%s1385_s16 + $0x3e8] sm:$0xff]  ;;  %v1295_v63 = vcombine.low %v258_v52, %v262_v53  ;;  %v188_v45 = vld [vmem:[%s1385_s16 + $0x158] sm:$0xff] }
  0x30   : > { %v1302_v2 = vcombine.high %v265_v58, %v269_v59  ;;  %v1304_v3 = vcombine.high %v266_v60, %v270_v61  ;;  %v195_v51 = vld [vmem:[%s1385_s16 + $0x190] sm:$0xff]  ;;  %v196_v53 = vld [vmem:[%s1385_s16 + $0x198] sm:$0xff] }
  0x31   : > { %939 = vmatpush1.bf16.msra.mxu0 %v1237_v6  ;;  %980 = vmatpush1.bf16.msra.mxu1 %v1239_v7  ;;  %v148_v6 = vld [vmem:[%s1385_s16 + $0x18] sm:$0xff]  ;;  %v199_v52 = vld [vmem:[%s1385_s16 + $0x1b0] sm:$0xff] }
  0x32   : > { %940 = vmatprep.subr.bf16.mxu0 %v1246_v8  ;;  %981 = vmatprep.subr.bf16.mxu1 %v1248_v9  ;;  %v152_v7 = vld [vmem:[%s1385_s16 + $0x38] sm:$0xff]  ;;  %v1301_v8 = vcombine.low %v265_v58, %v269_v59  ;;  %v1303_v9 = vcombine.low %v266_v60, %v270_v61  ;;  %v203_v59 = vld [vmem:[%s1385_s16 + $0x1d0] sm:$0xff] }
  0x33   : > { %v1188_v11 = vcombine.high %v148_v6, %v152_v7  ;;  %v207_v60 = vld [vmem:[%s1385_s16 + $0x1f0] sm:$0xff]  ;;  %v204_v61 = vld [vmem:[%s1385_s16 + $0x1d8] sm:$0xff] }
  0x35   : > { %941 = vmatpush1.bf16.msra.mxu0 %v1245_v14  ;;  %982 = vmatpush1.bf16.msra.mxu1 %v1247_v15  ;;  %v156_v14 = vld [vmem:[%s1385_s16 + $0x58] sm:$0xff] }
  0x36   : > { %942 = vmatprep.subr.bf16.mxu0 %v1254_v16  ;;  %983 = vmatprep.subr.bf16.mxu1 %v1256_v17  ;;  %v160_v15 = vld [vmem:[%s1385_s16 + $0x78] sm:$0xff]  ;;  %v1185_v16 = vcombine.low %v147_v4, %v151_v5  ;;  %v1187_v17 = vcombine.low %v148_v6, %v152_v7  ;;  %v211_v5 = vld [vmem:[%s1385_s16 + $0x210] sm:$0xff] }
  0x37   : > { %v1196_v19 = vcombine.high %v156_v14, %v160_v15  ;;  %v215_v6 = vld [vmem:[%s1385_s16 + $0x230] sm:$0xff]  ;;  %v212_v7 = vld [vmem:[%s1385_s16 + $0x218] sm:$0xff] }
  0x39   : > { %943 = vmatpush1.bf16.msra.mxu0 %v1253_v22  ;;  %984 = vmatpush1.bf16.msra.mxu1 %v1255_v23  ;;  %v164_v22 = vld [vmem:[%s1385_s16 + $0x98] sm:$0xff] }
  0x3a   : > { %944 = vmatprep.subr.bf16.mxu0 %v1262_v24  ;;  %985 = vmatprep.subr.bf16.mxu1 %v1264_v25  ;;  %v168_v23 = vld [vmem:[%s1385_s16 + $0xb8] sm:$0xff]  ;;  %v1193_v24 = vcombine.low %v155_v12, %v159_v13  ;;  %v1195_v25 = vcombine.low %v156_v14, %v160_v15  ;;  %v219_v13 = vld [vmem:[%s1385_s16 + $0x250] sm:$0xff] }
  0x3b   : > { %v1204_v27 = vcombine.high %v164_v22, %v168_v23  ;;  %v223_v14 = vld [vmem:[%s1385_s16 + $0x270] sm:$0xff]  ;;  %v220_v15 = vld [vmem:[%s1385_s16 + $0x258] sm:$0xff] }
  0x3d   : > { %945 = vmatpush1.bf16.msra.mxu0 %v1261_v30  ;;  %986 = vmatpush1.bf16.msra.mxu1 %v1263_v31  ;;  %v172_v30 = vld [vmem:[%s1385_s16 + $0xd8] sm:$0xff] }
  0x3e   : > { %946 = vmatprep.subr.bf16.mxu0 %v1270_v32  ;;  %987 = vmatprep.subr.bf16.mxu1 %v1272_v33  ;;  %v176_v31 = vld [vmem:[%s1385_s16 + $0xf8] sm:$0xff]  ;;  %v1201_v32 = vcombine.low %v163_v20, %v167_v21  ;;  %v1203_v33 = vcombine.low %v164_v22, %v168_v23  ;;  %v227_v21 = vld [vmem:[%s1385_s16 + $0x290] sm:$0xff] }
  0x3f   : > { %v1212_v35 = vcombine.high %v172_v30, %v176_v31  ;;  %v231_v22 = vld [vmem:[%s1385_s16 + $0x2b0] sm:$0xff]  ;;  %v228_v23 = vld [vmem:[%s1385_s16 + $0x298] sm:$0xff] }
  0x41   : > { %947 = vmatpush1.bf16.msra.mxu0 %v1269_v38  ;;  %988 = vmatpush1.bf16.msra.mxu1 %v1271_v39  ;;  %v180_v38 = vld [vmem:[%s1385_s16 + $0x118] sm:$0xff] }
  0x42   : > { %948 = vmatprep.subr.bf16.mxu0 %v1278_v40  ;;  %989 = vmatprep.subr.bf16.mxu1 %v1280_v41  ;;  %v184_v39 = vld [vmem:[%s1385_s16 + $0x138] sm:$0xff]  ;;  %v1209_v40 = vcombine.low %v171_v28, %v175_v29  ;;  %v1218_v41 = vcombine.high %v179_v36, %v183_v37  ;;  %v235_v29 = vld [vmem:[%s1385_s16 + $0x2d0] sm:$0xff] }
  0x43   : > { %v1220_v42 = vcombine.high %v180_v38, %v184_v39 }
  0x45   : > { %949 = vmatpush1.bf16.msra.mxu0 %v1277_v46  ;;  %990 = vmatpush1.bf16.msra.mxu1 %v1279_v47  ;;  %v192_v46 = vld [vmem:[%s1385_s16 + $0x178] sm:$0xff]  ;;  %v1217_v47 = vcombine.low %v179_v36, %v183_v37  ;;  %v243_v37 = vld [vmem:[%s1385_s16 + $0x310] sm:$0xff] }
  0x46   : > { %950 = vmatprep.subr.bf16.mxu0 %v1286_v48  ;;  %991 = vmatprep.subr.bf16.mxu1 %v1288_v49  ;;  %v1219_v48 = vcombine.low %v180_v38, %v184_v39  ;;  %v1226_v49 = vcombine.high %v187_v43, %v191_v44  ;;  %v1228_v50 = vcombine.high %v188_v45, %v192_v46  ;;  %v247_v38 = vld [vmem:[%s1385_s16 + $0x330] sm:$0xff]  ;;  %v244_v39 = vld [vmem:[%s1385_s16 + $0x318] sm:$0xff] }
  0x49   : > { %951 = vmatpush1.bf16.msra.mxu0 %v1285_v54  ;;  %992 = vmatpush1.bf16.msra.mxu1 %v1287_v55  ;;  %v200_v54 = vld [vmem:[%s1385_s16 + $0x1b8] sm:$0xff]  ;;  %v1225_v55 = vcombine.low %v187_v43, %v191_v44  ;;  %v251_v44 = vld [vmem:[%s1385_s16 + $0x350] sm:$0xff] }
  0x4a   : > { %952 = vmatprep.subr.bf16.mxu0 %v1294_v56  ;;  %993 = vmatprep.subr.bf16.mxu1 %v1296_v57  ;;  %v1227_v56 = vcombine.low %v188_v45, %v192_v46  ;;  %v1234_v57 = vcombine.high %v195_v51, %v199_v52  ;;  %v1236_v58 = vcombine.high %v196_v53, %v200_v54  ;;  %v255_v45 = vld [vmem:[%s1385_s16 + $0x370] sm:$0xff]  ;;  %v252_v46 = vld [vmem:[%s1385_s16 + $0x358] sm:$0xff] }
  0x4d   : > { %953 = vmatpush1.bf16.msra.mxu0 %v1293_v62  ;;  %994 = vmatpush1.bf16.msra.mxu1 %v1295_v63  ;;  %v208_v62 = vld [vmem:[%s1385_s16 + $0x1f8] sm:$0xff]  ;;  %v1233_v63 = vcombine.low %v195_v51, %v199_v52  ;;  %v259_v52 = vld [vmem:[%s1385_s16 + $0x390] sm:$0xff] }
  0x4e   : > { %954 = vmatprep.subr.bf16.mxu0 %v1302_v2  ;;  %995 = vmatprep.subr.bf16.mxu1 %v1304_v3  ;;  %v1235_v2 = vcombine.low %v196_v53, %v200_v54  ;;  %v1242_v3 = vcombine.high %v203_v59, %v207_v60  ;;  %v1244_v4 = vcombine.high %v204_v61, %v208_v62  ;;  %v263_v53 = vld [vmem:[%s1385_s16 + $0x3b0] sm:$0xff]  ;;  %v260_v54 = vld [vmem:[%s1385_s16 + $0x398] sm:$0xff] }
  0x51   : > { %955 = vmatpush1.bf16.msra.mxu0 %v1301_v8  ;;  %996 = vmatpush1.bf16.msra.mxu1 %v1303_v9  ;;  %v216_v8 = vld [vmem:[%s1385_s16 + $0x238] sm:$0xff]  ;;  %v1241_v9 = vcombine.low %v203_v59, %v207_v60  ;;  %v267_v60 = vld [vmem:[%s1385_s16 + $0x3d0] sm:$0xff] }
  0x52   : > { %1006 = vmatprep.subr.bf16.mxu0 %v1186_v10  ;;  %1047 = vmatprep.subr.bf16.mxu1 %v1188_v11  ;;  %v1243_v10 = vcombine.low %v204_v61, %v208_v62  ;;  %v1250_v11 = vcombine.high %v211_v5, %v215_v6  ;;  %v1252_v12 = vcombine.high %v212_v7, %v216_v8  ;;  %v271_v61 = vld [vmem:[%s1385_s16 + $0x3f0] sm:$0xff]  ;;  %v268_v62 = vld [vmem:[%s1385_s16 + $0x3d8] sm:$0xff] }
  0x54   : > { %957 = vmatmul.mubr.bf16.vlgmr.msra.gmra.mrb[0].mxu0 %v1371_v0  ;;  %998 = vmatmul.mubr.bf16.vlgmr.msra.gmra.mrb[0].mxu1 %v1371_v0 }
  0x55   : > { %1007 = vmatpush1.bf16.msra.mxu0 %v1185_v16  ;;  %1048 = vmatpush1.bf16.msra.mxu1 %v1187_v17  ;;  %v224_v16 = vld [vmem:[%s1385_s16 + $0x278] sm:$0xff]  ;;  %v1249_v17 = vcombine.low %v211_v5, %v215_v6  ;;  %v1305_v6 = vcombine.low %v267_v60, %v271_v61 }
  0x56   : > { %1008 = vmatprep.subr.bf16.mxu0 %v1194_v18  ;;  %1049 = vmatprep.subr.bf16.mxu1 %v1196_v19  ;;  %v1251_v18 = vcombine.low %v212_v7, %v216_v8  ;;  %v1258_v19 = vcombine.high %v219_v13, %v223_v14  ;;  %v1260_v20 = vcombine.high %v220_v15, %v224_v16 }
  0x57   : > { %1038 = vmatprep.mubr.bf16.mxu0 %v1375_v1  ;;  %1079 = vmatprep.mubr.bf16.mxu1 %v1375_v1  ;;  %v1211_v1 = vcombine.low %v172_v30, %v176_v31  ;;  %v239_v30 = vld [vmem:[%s1385_s16 + $0x2f0] sm:$0xff]  ;;  %v236_v31 = vld [vmem:[%s1385_s16 + $0x2d8] sm:$0xff] }
  0x59   : > { %1009 = vmatpush1.bf16.msra.mxu0 %v1193_v24  ;;  %1050 = vmatpush1.bf16.msra.mxu1 %v1195_v25  ;;  %v232_v24 = vld [vmem:[%s1385_s16 + $0x2b8] sm:$0xff]  ;;  %v1257_v25 = vcombine.low %v219_v13, %v223_v14 }
  0x5a   : > { %1010 = vmatprep.subr.bf16.mxu0 %v1202_v26  ;;  %1051 = vmatprep.subr.bf16.mxu1 %v1204_v27  ;;  %v1259_v26 = vcombine.low %v220_v15, %v224_v16  ;;  %v1266_v27 = vcombine.high %v227_v21, %v231_v22  ;;  %v1268_v28 = vcombine.high %v228_v23, %v232_v24 }
  0x5d   : > { %1011 = vmatpush1.bf16.msra.mxu0 %v1201_v32  ;;  %1052 = vmatpush1.bf16.msra.mxu1 %v1203_v33  ;;  %v240_v32 = vld [vmem:[%s1385_s16 + $0x2f8] sm:$0xff]  ;;  %v1265_v33 = vcombine.low %v227_v21, %v231_v22 }
  0x5e   : > { %1012 = vmatprep.subr.bf16.mxu0 %v1210_v34  ;;  %1053 = vmatprep.subr.bf16.mxu1 %v1212_v35  ;;  %v1267_v34 = vcombine.low %v228_v23, %v232_v24  ;;  %v1274_v35 = vcombine.high %v235_v29, %v239_v30  ;;  %v1276_v36 = vcombine.high %v236_v31, %v240_v32 }
  0x61   : > { %1013 = vmatpush1.bf16.msra.mxu0 %v1209_v40  ;;  %1054 = vmatpush1.bf16.msra.mxu1 %v1211_v1  ;;  %v248_v40 = vld [vmem:[%s1385_s16 + $0x338] sm:$0xff]  ;;  %v1273_v1 = vcombine.low %v235_v29, %v239_v30 }
  0x62   : > { %1014 = vmatprep.subr.bf16.mxu0 %v1218_v41  ;;  %1055 = vmatprep.subr.bf16.mxu1 %v1220_v42  ;;  %v1275_v41 = vcombine.low %v236_v31, %v240_v32  ;;  %v1282_v42 = vcombine.high %v243_v37, %v247_v38  ;;  %v1284_v43 = vcombine.high %v244_v39, %v248_v40 }
  0x65   : > { %1015 = vmatpush1.bf16.msra.mxu0 %v1217_v47  ;;  %1056 = vmatpush1.bf16.msra.mxu1 %v1219_v48  ;;  %v256_v47 = vld [vmem:[%s1385_s16 + $0x378] sm:$0xff]  ;;  %v1281_v48 = vcombine.low %v243_v37, %v247_v38 }
  0x66   : > { %1016 = vmatprep.subr.bf16.mxu0 %v1226_v49  ;;  %1057 = vmatprep.subr.bf16.mxu1 %v1228_v50  ;;  %v1283_v49 = vcombine.low %v244_v39, %v248_v40  ;;  %v1290_v50 = vcombine.high %v251_v44, %v255_v45  ;;  %v1292_v51 = vcombine.high %v252_v46, %v256_v47 }
  0x69   : > { %1017 = vmatpush1.bf16.msra.mxu0 %v1225_v55  ;;  %1058 = vmatpush1.bf16.msra.mxu1 %v1227_v56  ;;  %v264_v55 = vld [vmem:[%s1385_s16 + $0x3b8] sm:$0xff]  ;;  %v1289_v56 = vcombine.low %v251_v44, %v255_v45 }
  0x6a   : > { %1018 = vmatprep.subr.bf16.mxu0 %v1234_v57  ;;  %1059 = vmatprep.subr.bf16.mxu1 %v1236_v58  ;;  %v1291_v57 = vcombine.low %v252_v46, %v256_v47  ;;  %v1298_v58 = vcombine.high %v259_v52, %v263_v53  ;;  %v1300_v59 = vcombine.high %v260_v54, %v264_v55 }
  0x6d   : > { %1019 = vmatpush1.bf16.msra.mxu0 %v1233_v63  ;;  %1060 = vmatpush1.bf16.msra.mxu1 %v1235_v2  ;;  %v272_v63 = vld [vmem:[%s1385_s16 + $0x3f8] sm:$0xff]  ;;  %v1297_v2 = vcombine.low %v259_v52, %v263_v53 }
  0x6e   : > { %1020 = vmatprep.subr.bf16.mxu0 %v1242_v3  ;;  %1061 = vmatprep.subr.bf16.mxu1 %v1244_v4  ;;  %v1299_v3 = vcombine.low %v260_v54, %v264_v55  ;;  %v1306_v4 = vcombine.high %v267_v60, %v271_v61  ;;  %v1308_v5 = vcombine.high %v268_v62, %v272_v63 }
  0x6f   : > { %v1307_v7 = vcombine.low %v268_v62, %v272_v63 }
  0x71   : > { %1021 = vmatpush1.bf16.msra.mxu0 %v1241_v9  ;;  %1062 = vmatpush1.bf16.msra.mxu1 %v1243_v10 }
  0x72   : > { %1022 = vmatprep.subr.bf16.mxu0 %v1250_v11  ;;  %1063 = vmatprep.subr.bf16.mxu1 %v1252_v12 }
  0x75   : > { %1023 = vmatpush1.bf16.msra.mxu0 %v1249_v17  ;;  %1064 = vmatpush1.bf16.msra.mxu1 %v1251_v18 }
  0x76   : > { %1024 = vmatprep.subr.bf16.mxu0 %v1258_v19  ;;  %1065 = vmatprep.subr.bf16.mxu1 %v1260_v20 }
  0x79   : > { %1025 = vmatpush1.bf16.msra.mxu0 %v1257_v25  ;;  %1066 = vmatpush1.bf16.msra.mxu1 %v1259_v26 }
  0x7a   : > { %1026 = vmatprep.subr.bf16.mxu0 %v1266_v27  ;;  %1067 = vmatprep.subr.bf16.mxu1 %v1268_v28 }
  0x7d   : > { %1027 = vmatpush1.bf16.msra.mxu0 %v1265_v33  ;;  %1068 = vmatpush1.bf16.msra.mxu1 %v1267_v34 }
  0x7e   : > { %1028 = vmatprep.subr.bf16.mxu0 %v1274_v35  ;;  %1069 = vmatprep.subr.bf16.mxu1 %v1276_v36 }
  0x81   : > { %1029 = vmatpush1.bf16.msra.mxu0 %v1273_v1  ;;  %1070 = vmatpush1.bf16.msra.mxu1 %v1275_v41 }
  0x82   : > { %1030 = vmatprep.subr.bf16.mxu0 %v1282_v42  ;;  %1071 = vmatprep.subr.bf16.mxu1 %v1284_v43 }
  0x85   : > { %1031 = vmatpush1.bf16.msra.mxu0 %v1281_v48  ;;  %1072 = vmatpush1.bf16.msra.mxu1 %v1283_v49 }
  0x86   : > { %1032 = vmatprep.subr.bf16.mxu0 %v1290_v50  ;;  %1073 = vmatprep.subr.bf16.mxu1 %v1292_v51 }
  0x89   : > { %1033 = vmatpush1.bf16.msra.mxu0 %v1289_v56  ;;  %1074 = vmatpush1.bf16.msra.mxu1 %v1291_v57 }
  0x8a   : > { %1034 = vmatprep.subr.bf16.mxu0 %v1298_v58  ;;  %1075 = vmatprep.subr.bf16.mxu1 %v1300_v59 }
  0x8d   : > { %1035 = vmatpush1.bf16.msra.mxu0 %v1297_v2  ;;  %1076 = vmatpush1.bf16.msra.mxu1 %v1299_v3 }
  0x8e   : > { %1036 = vmatprep.subr.bf16.mxu0 %v1306_v4  ;;  %1077 = vmatprep.subr.bf16.mxu1 %v1308_v5 }
  0x91   : > { %1037 = vmatpush1.bf16.msra.mxu0 %v1305_v6  ;;  %1078 = vmatpush1.bf16.msra.mxu1 %v1307_v7 }
  0x94   : > { %1039 = vmatmul.mubr.bf16.vlgmr.msra.gmra.mrb[4].mxu0 %v1371_v0  ;;  %1080 = vmatmul.mubr.bf16.vlgmr.msra.gmra.mrb[4].mxu1 %v1371_v0 }
 0x127   : > { %v958_v8 = vpop.f32.mrb[0].mxu0  ;;  %v999_v9 = vpop.f32.mrb[0].mxu1 }
 0x128   : > { %1321 = vtanh.f32 %v958_v8  ;;  %v960_v10 = vpop.f32.mrb[1].mxu0  ;;  %v1001_v11 = vpop.f32.mrb[1].mxu1 }
 0x129   : > { %1323 = vtanh.f32 %v999_v9  ;;  %v962_v12 = vpop.f32.mrb[2].mxu0  ;;  %v1003_v13 = vpop.f32.mrb[2].mxu1 }
 0x12a   : > { %1325 = vtanh.f32 %v960_v10  ;;  %v963_v14 = vpop.f32.mrb[3].mxu0  ;;  %v1004_v15 = vpop.f32.mrb[3].mxu1 }
 0x12b   : > { %1327 = vtanh.f32 %v1001_v11 }
 0x132   : > { %v1322_v16 = vpop.eup %1321 }
 0x133   : > { %v1324_v17 = vpop.eup %1323 }
 0x134   : > { %v1326_v18 = vpop.eup %1325 }
 0x135   : > { %v1328_v0 = vpop.eup %1327  ;;  %v1104_v19 = vcombine.low %v1322_v16, %v1326_v18 }
 0x136   : > { %v1105_v20 = vcombine.low %v1324_v17, %v1328_v0 }
 0x137   : > { %1112 = vst [vmem:[%s143_s20] sm:$0x77] %v1104_v19 }
 0x138   : > { %1113 = vst [vmem:[%s143_s20 + $0x8] sm:$0x77] %v1105_v20 }
 0x167   : > { %v1040_v21 = vpop.f32.mrb[4].mxu0  ;;  %v1081_v22 = vpop.f32.mrb[4].mxu1 }
 0x168   : > { %1329 = vtanh.f32 %v1040_v21  ;;  %v1042_v23 = vpop.f32.mrb[5].mxu0  ;;  %v1083_v24 = vpop.f32.mrb[5].mxu1 }
 0x169   : > { %1331 = vtanh.f32 %v1081_v22  ;;  %v1044_v25 = vpop.f32.mrb[6].mxu0  ;;  %v1085_v26 = vpop.f32.mrb[6].mxu1 }
 0x16a   : > { %1333 = vtanh.f32 %v1042_v23  ;;  %v1045_v27 = vpop.f32.mrb[7].mxu0  ;;  %v1086_v28 = vpop.f32.mrb[7].mxu1 }
 0x16b   : > { %1335 = vtanh.f32 %v1083_v24 }
 0x172   : > { %v1330_v29 = vpop.eup %1329 }
 0x173   : > { %v1332_v30 = vpop.eup %1331 }
 0x174   : > { %v1334_v31 = vpop.eup %1333 }
 0x175   : > { %v1336_v32 = vpop.eup %1335  ;;  %v1106_v33 = vcombine.low %v1330_v29, %v1334_v31 }
 0x176   : > { %v1107_v34 = vcombine.low %v1332_v30, %v1336_v32 }
 0x177   : > { %1114 = vst [vmem:[%s143_s20 + $0x10] sm:$0x77] %v1106_v33 }
 0x178   : > { %1115 = vst [vmem:[%s143_s20 + $0x18] sm:$0x77] %v1107_v34 }
 0x179 PF: > { %s12_s9 = sadd.s32 1, %s1343_s9  }
 0x17a   : > { %p9_p4 = scmp.ge.s32.totalorder %s12_s9, 4  }
 0x17c   :  { %11 = sbr.rel (!%p9_p4) target bundleno = 1 (0x1), region = 58 }

</bundles_post_ra>
